<compile_context>
chip_gen: v6e
topology: v6e:2x2x1
jax: 0.10.0
libtpu: 0.0.40
codegen_flags: <defaults>
</compile_context>

<pallas_src>
import functools

import numpy as np
import jax
import jax.numpy as jnp
from jax.experimental import pallas as pl
from jax.experimental.pallas import tpu as pltpu


# ----------------------------------------------------------------------------
# Pallas kernel: multi-tap matmul with fused bias + SiLU.
#   x_ref : (1, Lwin, K)  bf16   (flattened row-window incl. halo)
#   w_ref : (T, K, Cout)  bf16   (resident)
#   b_ref : (1, Cout)     f32    (resident)
#   o_ref : (1, TM, Cout)
#   out[m, :] = sum_t  x[off_t + m, :] @ W[t]   + b    (+ SiLU)
# ----------------------------------------------------------------------------
def _conv_tap_kernel(x_ref, w_ref, b_ref, o_ref, *, offsets, tm, apply_silu):
    acc = jnp.dot(x_ref[0, offsets[0]:offsets[0] + tm, :], w_ref[0],
                  preferred_element_type=jnp.float32)
    for t in range(1, len(offsets)):
        acc = acc + jnp.dot(x_ref[0, offsets[t]:offsets[t] + tm, :], w_ref[t],
                            preferred_element_type=jnp.float32)
    acc = acc + b_ref[...]
    if apply_silu:
        # SiLU = x * sigmoid(x); exp and approx reciprocal both go to the EUP.
        acc = acc * pl.reciprocal(1.0 + jnp.exp(-acc), approx=True)
    o_ref[0] = acc.astype(o_ref.dtype)


def _pick_tile_rows(ho, n_images, rows_per_th, extra_rows, row_width, k,
                    budget_bytes=2_500_000):
    """Largest divisor of `ho` whose VMEM window (lanes padded to 128) stays
    under `budget_bytes`; prefers leaving >=2 grid steps (v7x has 2 TCs)."""
    lane_k = -(-k // 128) * 128            # last dim is padded to 128 lanes

    def win_bytes(th):
        return (rows_per_th * th + extra_rows) * row_width * lane_k * 2

    divisors = [d for d in range(1, ho + 1) if ho % d == 0]
    fitting = [d for d in divisors if win_bytes(d) <= budget_bytes] or [1]
    multi = [d for d in fitting if n_images * (ho // d) >= 2]
    return max(multi) if multi else max(fitting)


def _tap_matmul(x_win, w_taps, bias, offsets, *, tm, silu, out_dtype):
    G, lwin, k = x_win.shape
    T, _, cout = w_taps.shape
    b2 = bias.reshape(1, cout).astype(jnp.float32)

    kernel = functools.partial(_conv_tap_kernel,
                               offsets=tuple(int(o) for o in offsets),
                               tm=int(tm), apply_silu=silu)
    cost = pl.CostEstimate(
        flops=2 * G * tm * k * cout * T,
        transcendentals=(G * tm * cout if silu else 0),
        bytes_accessed=(x_win.size * x_win.dtype.itemsize
                        + w_taps.size * w_taps.dtype.itemsize
                        + b2.size * 4
                        + G * tm * cout * np.dtype(out_dtype).itemsize),
    )
    return pl.pallas_call(
        kernel,
        out_shape=jax.ShapeDtypeStruct((G, tm, cout), out_dtype),
        grid=(G,),
        in_specs=[
            pl.BlockSpec((1, lwin, k), lambda i: (i, 0, 0)),   # streamed window
            pl.BlockSpec((T, k, cout), lambda i: (0, 0, 0)),   # weights resident
            pl.BlockSpec((1, cout), lambda i: (0, 0)),         # bias resident
        ],
        out_specs=pl.BlockSpec((1, tm, cout), lambda i: (i, 0, 0)),
        compiler_params=pltpu.CompilerParams(
            dimension_semantics=("parallel",),      # megacore / v7x dual-TC
            vmem_limit_bytes=32 * 1024 * 1024),     # safe on v5e/v6e/v7x
        cost_estimate=cost,
    )(x_win, w_taps, b2)


# ----------------------------------------------------------------------------
# stride-1 3x3 conv: padded input read directly (K = Cin, 9 taps).
# ----------------------------------------------------------------------------
def _conv3x3_s1(x_nhwc, w_hwio, bias, *, silu, out_dtype):
    N, H, W, C = x_nhwc.shape
    cout = w_hwio.shape[-1]
    Wp = W + 2
    Ho, Wo = H, W
    xp = jnp.pad(x_nhwc.astype(jnp.bfloat16), ((0, 0), (1, 1), (1, 1), (0, 0)))

    th = _pick_tile_rows(Ho, N, rows_per_th=1, extra_rows=2, row_width=Wp, k=C)
    n_t = Ho // th
    # Row windows with a 2-row halo, flattened to (rows*Wp) so the kernel's
    # 9 taps are plain contiguous static-offset slices.
    main = xp[:, :n_t * th].reshape(N, n_t, th, Wp, C)
    h0 = xp[:, th:n_t * th + 1:th][:, :, None]
    h1 = xp[:, th + 1:n_t * th + 2:th][:, :, None]
    win = jnp.concatenate([main, h0, h1], axis=2)            # (N, n_t, th+2, Wp, C)
    flat = win.reshape(N * n_t, (th + 2) * Wp, C)
    flat = jnp.pad(flat, ((0, 0), (0, 8), (0, 0)))           # slack for garbage cols

    w9 = w_hwio.reshape(9, C, cout).astype(jnp.bfloat16)     # tap order = (dh, dw)
    offsets = [dh * Wp + dw for dh in range(3) for dw in range(3)]
    out = _tap_matmul(flat, w9, bias, offsets, tm=th * Wp,
                      silu=silu, out_dtype=out_dtype)
    # Output was computed at padded width Wp; crop the 2 garbage columns.
    return out.reshape(N, Ho, Wp, cout)[:, :, :Wo, :]


# ----------------------------------------------------------------------------
# stride-2 3x3 conv: column shift+stride in JAX (K = 3*Cin), rows parity-split
# so the 3 remaining taps are contiguous slices.
# ----------------------------------------------------------------------------
def _conv3x3_s2(x_nhwc, w_hwio, bias, *, silu, out_dtype):
    N, H, W, C = x_nhwc.shape
    cout = w_hwio.shape[-1]
    Ho = (H - 1) // 2 + 1
    Wo = (W - 1) // 2 + 1
    xp = jnp.pad(x_nhwc.astype(jnp.bfloat16), ((0, 0), (1, 1), (1, 1), (0, 0)))

    cols = [xp[:, :, dw:dw + 2 * (Wo - 1) + 1:2, :] for dw in range(3)]
    xc = jnp.concatenate(cols, axis=-1)                      # (N, Hp, Wo, 3C)
    xe, xo = xc[:, 0::2], xc[:, 1::2]                        # row parity split

    th = _pick_tile_rows(Ho, N, rows_per_th=2, extra_rows=1, row_width=Wo, k=3 * C)
    n_t = Ho // th
    e_main = xe[:, :n_t * th].reshape(N, n_t, th, Wo, 3 * C)
    e_halo = xe[:, th:n_t * th + 1:th][:, :, None]
    o_main = xo[:, :n_t * th].reshape(N, n_t, th, Wo, 3 * C)
    win = jnp.concatenate([e_main, e_halo, o_main], axis=2)  # (N, n_t, 2th+1, Wo, 3C)
    flat = win.reshape(N * n_t, (2 * th + 1) * Wo, 3 * C)

    w3 = w_hwio.reshape(3, 3 * C, cout).astype(jnp.bfloat16)  # tap order = dh
    offsets = [0, (th + 1) * Wo, Wo]                           # dh = 0, 1, 2
    out = _tap_matmul(flat, w3, bias, offsets, tm=th * Wo,
                      silu=silu, out_dtype=out_dtype)
    return out.reshape(N, Ho, Wo, cout)


def conv3x3_pallas(x_nhwc, w_hwio, bias, *, stride=1, silu=True,
                   out_dtype=jnp.bfloat16):
    """3x3 conv, padding=1, stride in {1,2}, optional fused SiLU (NHWC)."""
    # NOTE: weights must be HWIO (PyTorch OIHW weights need .permute(2,3,1,0)).
    if stride == 1:
        return _conv3x3_s1(x_nhwc, w_hwio, bias, silu=silu, out_dtype=out_dtype)
    if stride == 2:
        return _conv3x3_s2(x_nhwc, w_hwio, bias, silu=silu, out_dtype=out_dtype)
    raise ValueError(f"unsupported stride {stride}")


# ----------------------------------------------------------------------------
# Parameter construction (deterministic, synthetic; matches module __init__)
# ----------------------------------------------------------------------------
def init_params(key,
                conditioning_embedding_channels=32,
                conditioning_channels=3,
                block_out_channels=(16, 32, 96, 256)):
    def conv_params(key, cin, cout, zero=False):
        if zero:  # zero_module() zeroes weight AND bias
            return (jnp.zeros((3, 3, cin, cout), jnp.float32),
                    jnp.zeros((cout,), jnp.float32))
        kw, kb = jax.random.split(key)
        fan_in = 9 * cin
        w = jax.random.normal(kw, (3, 3, cin, cout), jnp.float32) / jnp.sqrt(fan_in)
        b = jax.random.normal(kb, (cout,), jnp.float32) * 0.01
        return w, b

    keys = jax.random.split(key, 2 + 2 * (len(block_out_channels) - 1))
    ki = iter(keys)

    conv_in = conv_params(next(ki), conditioning_channels, block_out_channels[0])

    blocks = []
    for i in range(len(block_out_channels) - 1):
        cin = block_out_channels[i]
        cout = block_out_channels[i + 1]
        blocks.append(conv_params(next(ki), cin, cin) + (1,))    # stride 1
        blocks.append(conv_params(next(ki), cin, cout) + (2,))   # stride 2

    conv_out = conv_params(next(ki), block_out_channels[-1],
                           conditioning_embedding_channels, zero=True)
    return conv_in, blocks, conv_out


# ----------------------------------------------------------------------------
# Forward pass (NCHW in / NCHW out, like the PyTorch module)
# ----------------------------------------------------------------------------
def controlnet_conditioning_embedding(conditioning_nchw, params, *,
                                      return_features=False):
    (w_in, b_in), blocks, (w_out, b_out) = params
    h = jnp.transpose(conditioning_nchw, (0, 2, 3, 1))           # NCHW -> NHWC
    h = conv3x3_pallas(h, w_in, b_in, stride=1, silu=True)       # conv_in + SiLU
    for (w, b, s) in blocks:                                     # blocks + SiLU
        h = conv3x3_pallas(h, w, b, stride=s, silu=True)
    feats = h                                                    # bf16 NHWC
    out = conv3x3_pallas(h, w_out, b_out, stride=1, silu=False,  # conv_out
                         out_dtype=conditioning_nchw.dtype)
    out = jnp.transpose(out, (0, 3, 1, 2))                       # NHWC -> NCHW
    if return_features:
        return out, feats
    return out


# ----------------------------------------------------------------------------
# Pure-JAX references (lax conv) with matching bf16-operand / f32-accumulate
# quantization points.
# ----------------------------------------------------------------------------
def _conv_ref(x_nhwc, w_hwio, b, stride, silu, out_dtype):
    y = jax.lax.conv_general_dilated(
        x_nhwc.astype(jnp.bfloat16), w_hwio.astype(jnp.bfloat16),
        (stride, stride), ((1, 1), (1, 1)),
        dimension_numbers=("NHWC", "HWIO", "NHWC"),
        preferred_element_type=jnp.float32)
    y = y + b.reshape(1, 1, 1, -1).astype(jnp.float32)
    if silu:
        y = y * jax.nn.sigmoid(y)
    return y.astype(out_dtype)


def _ref_forward(conditioning_nchw, params):
    (w_in, b_in), blocks, (w_out, b_out) = params
    h = jnp.transpose(conditioning_nchw, (0, 2, 3, 1))
    h = _conv_ref(h, w_in, b_in, 1, True, jnp.bfloat16)
    for (w, b, s) in blocks:
        h = _conv_ref(h, w, b, s, True, jnp.bfloat16)
    feats = h
    out = _conv_ref(h, w_out, b_out, 1, False, conditioning_nchw.dtype)
    return jnp.transpose(out, (0, 3, 1, 2)), feats


if __name__ == "__main__":
    key = jax.random.PRNGKey(0)
    kp, kx, k1, k2, kw1, kb1, kw2, kb2 = jax.random.split(key, 8)

    # --- direct numerical checks of the conv kernel (non-zero weights) ------
    # stride 1 + fused SiLU
    x1 = jax.random.normal(k1, (2, 12, 10, 5), jnp.float32)
    w1 = jax.random.normal(kw1, (3, 3, 5, 16), jnp.float32) / np.sqrt(45.0)
    b1 = jax.random.normal(kb1, (16,), jnp.float32) * 0.1
    y1 = conv3x3_pallas(x1, w1, b1, stride=1, silu=True, out_dtype=jnp.float32)
    r1 = _conv_ref(x1, w1, b1, 1, True, jnp.float32)
    y1 = jax.block_until_ready(y1)
    assert y1.shape == r1.shape == (2, 12, 10, 16)
    assert jnp.allclose(y1, r1, atol=2e-2, rtol=2e-2), \
        float(jnp.max(jnp.abs(y1 - r1)))

    # stride 2, no activation, odd spatial dims
    x2 = jax.random.normal(k2, (2, 11, 9, 8), jnp.float32)
    w2 = jax.random.normal(kw2, (3, 3, 8, 24), jnp.float32) / np.sqrt(72.0)
    b2 = jax.random.normal(kb2, (24,), jnp.float32) * 0.1
    y2 = conv3x3_pallas(x2, w2, b2, stride=2, silu=False, out_dtype=jnp.float32)
    r2 = _conv_ref(x2, w2, b2, 2, False, jnp.float32)
    y2 = jax.block_until_ready(y2)
    assert y2.shape == r2.shape == (2, 6, 5, 24)
    assert jnp.allclose(y2, r2, atol=2e-2, rtol=2e-2), \
        float(jnp.max(jnp.abs(y2 - r2)))

    # --- full module ---------------------------------------------------------
    params = init_params(kp,
                         conditioning_embedding_channels=32,
                         conditioning_channels=3,
                         block_out_channels=(16, 32, 96, 256))

    # Small NCHW conditioning image: (batch=2, channels=3, 16, 16)
    x = jax.random.normal(kx, (2, 3, 16, 16), jnp.float32)

    fwd = jax.jit(functools.partial(controlnet_conditioning_embedding,
                                    params=params, return_features=True))
    out, feats = fwd(x)
    out = jax.block_until_ready(out)
    feats = jax.block_until_ready(feats)
    assert out.shape == (2, 32, 2, 2), out.shape             # 16 -> 8 -> 4 -> 2

    ref_out, ref_feats = _ref_forward(x, params)
    ref_out = jax.block_until_ready(ref_out)

    # conv_out is zero-initialized (zero_module), so the module output is
    # exactly zero; the pre-conv_out features are the real numerical check.
    assert jnp.all(out == 0.0)
    assert jnp.allclose(out, ref_out, atol=1e-6)

    f = feats.astype(jnp.float32)
    rf = ref_feats.astype(jnp.float32)
    err = float(jnp.max(jnp.abs(f - rf)))
    scale = float(jnp.max(jnp.abs(rf))) + 1e-6
    assert err <= 5e-2 * scale + 1e-5, (err, scale)

    print("KERNEL_OK")
</pallas_src>

<mosaic_0001>
module attributes {stable_mosaic.version = 11 : i64} {
  func.func @_conv_tap_kernel(%arg0: i32, %arg1: memref<1x176x5xbf16, #tpu.memory_space<vmem>>, %arg2: memref<9x5x16xbf16, #tpu.memory_space<vmem>>, %arg3: memref<1x16xf32, #tpu.memory_space<vmem>>, %arg4: memref<1x144x16xf32, #tpu.memory_space<vmem>>) attributes {dimension_semantics = [#tpu.dimension_semantics<parallel>], iteration_bounds = array<i64: 2>, scalar_prefetch = 0 : i64, scratch_operands = 0 : i64, tpu.core_type = #tpu.core_type<tc>, window_params = [{transform_indices = @transform_0, window_bounds = array<i64: 1, 176, 5>}, {pipeline_mode = #tpu.pipeline_mode<synchronous>, transform_indices = @transform_1, window_bounds = array<i64: 9, 5, 16>}, {pipeline_mode = #tpu.pipeline_mode<synchronous>, transform_indices = @transform_2, window_bounds = array<i64: 1, 16>}, {transform_indices = @transform_3, window_bounds = array<i64: 1, 144, 16>}]} {
    %c0 = arith.constant 0 : index
    %c0_0 = arith.constant 0 : index
    %c0_1 = arith.constant 0 : index
    %0 = vector.load %arg1[%c0, %c0_0, %c0_1] : memref<1x176x5xbf16, #tpu.memory_space<vmem>>, vector<1x144x5xbf16>
    %1 = vector.shape_cast %0 : vector<1x144x5xbf16> to vector<144x5xbf16>
    %c0_2 = arith.constant 0 : index
    %c0_3 = arith.constant 0 : index
    %c0_4 = arith.constant 0 : index
    %2 = vector.load %arg2[%c0_2, %c0_3, %c0_4] : memref<9x5x16xbf16, #tpu.memory_space<vmem>>, vector<1x5x16xbf16>
    %3 = vector.shape_cast %2 : vector<1x5x16xbf16> to vector<5x16xbf16>
    %cst = arith.constant dense<0.000000e+00> : vector<144x16xf32>
    %4 = tpu.matmul %1, %3, %cst {dimension_numbers = #tpu.dot_dimension_numbers<[1], [0], [0], [1], [0, 0, 1, 1], [], []>} : vector<144x5xbf16>, vector<5x16xbf16>, vector<144x16xf32> -> vector<144x16xf32>
    %c0_5 = arith.constant 0 : index
    %c1 = arith.constant 1 : index
    %c0_6 = arith.constant 0 : index
    %5 = vector.load %arg1[%c0_5, %c1, %c0_6] : memref<1x176x5xbf16, #tpu.memory_space<vmem>>, vector<1x144x5xbf16>
    %6 = vector.shape_cast %5 : vector<1x144x5xbf16> to vector<144x5xbf16>
    %c1_7 = arith.constant 1 : index
    %c0_8 = arith.constant 0 : index
    %c0_9 = arith.constant 0 : index
    %7 = vector.load %arg2[%c1_7, %c0_8, %c0_9] : memref<9x5x16xbf16, #tpu.memory_space<vmem>>, vector<1x5x16xbf16>
    %8 = vector.shape_cast %7 : vector<1x5x16xbf16> to vector<5x16xbf16>
    %cst_10 = arith.constant dense<0.000000e+00> : vector<144x16xf32>
    %9 = tpu.matmul %6, %8, %cst_10 {dimension_numbers = #tpu.dot_dimension_numbers<[1], [0], [0], [1], [0, 0, 1, 1], [], []>} : vector<144x5xbf16>, vector<5x16xbf16>, vector<144x16xf32> -> vector<144x16xf32>
    %10 = arith.addf %4, %9 : vector<144x16xf32>
    %c0_11 = arith.constant 0 : index
    %c2 = arith.constant 2 : index
    %c0_12 = arith.constant 0 : index
    %11 = vector.load %arg1[%c0_11, %c2, %c0_12] : memref<1x176x5xbf16, #tpu.memory_space<vmem>>, vector<1x144x5xbf16>
    %12 = vector.shape_cast %11 : vector<1x144x5xbf16> to vector<144x5xbf16>
    %c2_13 = arith.constant 2 : index
    %c0_14 = arith.constant 0 : index
    %c0_15 = arith.constant 0 : index
    %13 = vector.load %arg2[%c2_13, %c0_14, %c0_15] : memref<9x5x16xbf16, #tpu.memory_space<vmem>>, vector<1x5x16xbf16>
    %14 = vector.shape_cast %13 : vector<1x5x16xbf16> to vector<5x16xbf16>
    %cst_16 = arith.constant dense<0.000000e+00> : vector<144x16xf32>
    %15 = tpu.matmul %12, %14, %cst_16 {dimension_numbers = #tpu.dot_dimension_numbers<[1], [0], [0], [1], [0, 0, 1, 1], [], []>} : vector<144x5xbf16>, vector<5x16xbf16>, vector<144x16xf32> -> vector<144x16xf32>
    %16 = arith.addf %10, %15 : vector<144x16xf32>
    %c0_17 = arith.constant 0 : index
    %c12 = arith.constant 12 : index
    %c0_18 = arith.constant 0 : index
    %17 = vector.load %arg1[%c0_17, %c12, %c0_18] : memref<1x176x5xbf16, #tpu.memory_space<vmem>>, vector<1x144x5xbf16>
    %18 = vector.shape_cast %17 : vector<1x144x5xbf16> to vector<144x5xbf16>
    %c3 = arith.constant 3 : index
    %c0_19 = arith.constant 0 : index
    %c0_20 = arith.constant 0 : index
    %19 = vector.load %arg2[%c3, %c0_19, %c0_20] : memref<9x5x16xbf16, #tpu.memory_space<vmem>>, vector<1x5x16xbf16>
    %20 = vector.shape_cast %19 : vector<1x5x16xbf16> to vector<5x16xbf16>
    %cst_21 = arith.constant dense<0.000000e+00> : vector<144x16xf32>
    %21 = tpu.matmul %18, %20, %cst_21 {dimension_numbers = #tpu.dot_dimension_numbers<[1], [0], [0], [1], [0, 0, 1, 1], [], []>} : vector<144x5xbf16>, vector<5x16xbf16>, vector<144x16xf32> -> vector<144x16xf32>
    %22 = arith.addf %16, %21 : vector<144x16xf32>
    %c0_22 = arith.constant 0 : index
    %c13 = arith.constant 13 : index
    %c0_23 = arith.constant 0 : index
    %23 = vector.load %arg1[%c0_22, %c13, %c0_23] : memref<1x176x5xbf16, #tpu.memory_space<vmem>>, vector<1x144x5xbf16>
    %24 = vector.shape_cast %23 : vector<1x144x5xbf16> to vector<144x5xbf16>
    %c4 = arith.constant 4 : index
    %c0_24 = arith.constant 0 : index
    %c0_25 = arith.constant 0 : index
    %25 = vector.load %arg2[%c4, %c0_24, %c0_25] : memref<9x5x16xbf16, #tpu.memory_space<vmem>>, vector<1x5x16xbf16>
    %26 = vector.shape_cast %25 : vector<1x5x16xbf16> to vector<5x16xbf16>
    %cst_26 = arith.constant dense<0.000000e+00> : vector<144x16xf32>
    %27 = tpu.matmul %24, %26, %cst_26 {dimension_numbers = #tpu.dot_dimension_numbers<[1], [0], [0], [1], [0, 0, 1, 1], [], []>} : vector<144x5xbf16>, vector<5x16xbf16>, vector<144x16xf32> -> vector<144x16xf32>
    %28 = arith.addf %22, %27 : vector<144x16xf32>
    %c0_27 = arith.constant 0 : index
    %c14 = arith.constant 14 : index
    %c0_28 = arith.constant 0 : index
    %29 = vector.load %arg1[%c0_27, %c14, %c0_28] : memref<1x176x5xbf16, #tpu.memory_space<vmem>>, vector<1x144x5xbf16>
    %30 = vector.shape_cast %29 : vector<1x144x5xbf16> to vector<144x5xbf16>
    %c5 = arith.constant 5 : index
    %c0_29 = arith.constant 0 : index
    %c0_30 = arith.constant 0 : index
    %31 = vector.load %arg2[%c5, %c0_29, %c0_30] : memref<9x5x16xbf16, #tpu.memory_space<vmem>>, vector<1x5x16xbf16>
    %32 = vector.shape_cast %31 : vector<1x5x16xbf16> to vector<5x16xbf16>
    %cst_31 = arith.constant dense<0.000000e+00> : vector<144x16xf32>
    %33 = tpu.matmul %30, %32, %cst_31 {dimension_numbers = #tpu.dot_dimension_numbers<[1], [0], [0], [1], [0, 0, 1, 1], [], []>} : vector<144x5xbf16>, vector<5x16xbf16>, vector<144x16xf32> -> vector<144x16xf32>
    %34 = arith.addf %28, %33 : vector<144x16xf32>
    %c0_32 = arith.constant 0 : index
    %c24 = arith.constant 24 : index
    %c0_33 = arith.constant 0 : index
    %35 = vector.load %arg1[%c0_32, %c24, %c0_33] : memref<1x176x5xbf16, #tpu.memory_space<vmem>>, vector<1x144x5xbf16>
    %36 = vector.shape_cast %35 : vector<1x144x5xbf16> to vector<144x5xbf16>
    %c6 = arith.constant 6 : index
    %c0_34 = arith.constant 0 : index
    %c0_35 = arith.constant 0 : index
    %37 = vector.load %arg2[%c6, %c0_34, %c0_35] : memref<9x5x16xbf16, #tpu.memory_space<vmem>>, vector<1x5x16xbf16>
    %38 = vector.shape_cast %37 : vector<1x5x16xbf16> to vector<5x16xbf16>
    %cst_36 = arith.constant dense<0.000000e+00> : vector<144x16xf32>
    %39 = tpu.matmul %36, %38, %cst_36 {dimension_numbers = #tpu.dot_dimension_numbers<[1], [0], [0], [1], [0, 0, 1, 1], [], []>} : vector<144x5xbf16>, vector<5x16xbf16>, vector<144x16xf32> -> vector<144x16xf32>
    %40 = arith.addf %34, %39 : vector<144x16xf32>
    %c0_37 = arith.constant 0 : index
    %c25 = arith.constant 25 : index
    %c0_38 = arith.constant 0 : index
    %41 = vector.load %arg1[%c0_37, %c25, %c0_38] : memref<1x176x5xbf16, #tpu.memory_space<vmem>>, vector<1x144x5xbf16>
    %42 = vector.shape_cast %41 : vector<1x144x5xbf16> to vector<144x5xbf16>
    %c7 = arith.constant 7 : index
    %c0_39 = arith.constant 0 : index
    %c0_40 = arith.constant 0 : index
    %43 = vector.load %arg2[%c7, %c0_39, %c0_40] : memref<9x5x16xbf16, #tpu.memory_space<vmem>>, vector<1x5x16xbf16>
    %44 = vector.shape_cast %43 : vector<1x5x16xbf16> to vector<5x16xbf16>
    %cst_41 = arith.constant dense<0.000000e+00> : vector<144x16xf32>
    %45 = tpu.matmul %42, %44, %cst_41 {dimension_numbers = #tpu.dot_dimension_numbers<[1], [0], [0], [1], [0, 0, 1, 1], [], []>} : vector<144x5xbf16>, vector<5x16xbf16>, vector<144x16xf32> -> vector<144x16xf32>
    %46 = arith.addf %40, %45 : vector<144x16xf32>
    %c0_42 = arith.constant 0 : index
    %c26 = arith.constant 26 : index
    %c0_43 = arith.constant 0 : index
    %47 = vector.load %arg1[%c0_42, %c26, %c0_43] : memref<1x176x5xbf16, #tpu.memory_space<vmem>>, vector<1x144x5xbf16>
    %48 = vector.shape_cast %47 : vector<1x144x5xbf16> to vector<144x5xbf16>
    %c8 = arith.constant 8 : index
    %c0_44 = arith.constant 0 : index
    %c0_45 = arith.constant 0 : index
    %49 = vector.load %arg2[%c8, %c0_44, %c0_45] : memref<9x5x16xbf16, #tpu.memory_space<vmem>>, vector<1x5x16xbf16>
    %50 = vector.shape_cast %49 : vector<1x5x16xbf16> to vector<5x16xbf16>
    %cst_46 = arith.constant dense<0.000000e+00> : vector<144x16xf32>
    %51 = tpu.matmul %48, %50, %cst_46 {dimension_numbers = #tpu.dot_dimension_numbers<[1], [0], [0], [1], [0, 0, 1, 1], [], []>} : vector<144x5xbf16>, vector<5x16xbf16>, vector<144x16xf32> -> vector<144x16xf32>
    %52 = arith.addf %46, %51 : vector<144x16xf32>
    %c0_47 = arith.constant 0 : index
    %c0_48 = arith.constant 0 : index
    %53 = vector.load %arg3[%c0_47, %c0_48] : memref<1x16xf32, #tpu.memory_space<vmem>>, vector<1x16xf32>
    %54 = vector.broadcast %53 : vector<1x16xf32> to vector<144x16xf32>
    %55 = arith.addf %52, %54 : vector<144x16xf32>
    %cst_49 = arith.constant 0.000000e+00 : f32
    %56 = vector.broadcast %cst_49 : f32 to vector<144x16xf32>
    %57 = arith.subf %56, %55 : vector<144x16xf32>
    %58 = math.exp %57 : vector<144x16xf32>
    %cst_50 = arith.constant 1.000000e+00 : f32
    %59 = vector.broadcast %cst_50 : f32 to vector<144x16xf32>
    %60 = arith.addf %59, %58 : vector<144x16xf32>
    %61 = tpu.reciprocal %60 {approx = true} : vector<144x16xf32> -> vector<144x16xf32>
    %62 = arith.mulf %55, %61 : vector<144x16xf32>
    %c0_51 = arith.constant 0 : index
    %c0_52 = arith.constant 0 : index
    %c0_53 = arith.constant 0 : index
    %63 = vector.load %arg4[%c0_51, %c0_52, %c0_53] : memref<1x144x16xf32, #tpu.memory_space<vmem>>, vector<1x144x16xf32>
    %64 = vector.shape_cast %63 : vector<1x144x16xf32> to vector<144x16xf32>
    %65 = vector.shape_cast %62 : vector<144x16xf32> to vector<1x144x16xf32>
    tpu.vector_store %arg4[%c0_51, %c0_52, %c0_53], %65 {strides = array<i32>} : memref<1x144x16xf32, #tpu.memory_space<vmem>>, vector<1x144x16xf32>,
    return
  }
  func.func @transform_0(%arg0: i32) -> (i32, i32, i32) {
    %c0_i32 = arith.constant 0 : i32
    %c0_i32_0 = arith.constant 0 : i32
    %c0_i32_1 = arith.constant 0 : i32
    return %arg0, %c0_i32, %c0_i32_0 : i32, i32, i32
  }
  func.func @transform_1(%arg0: i32) -> (i32, i32, i32) {
    %c0_i32 = arith.constant 0 : i32
    %c0_i32_0 = arith.constant 0 : i32
    %c0_i32_1 = arith.constant 0 : i32
    %c0_i32_2 = arith.constant 0 : i32
    return %c0_i32, %c0_i32_0, %c0_i32_1 : i32, i32, i32
  }
  func.func @transform_2(%arg0: i32) -> (i32, i32) {
    %c0_i32 = arith.constant 0 : i32
    %c0_i32_0 = arith.constant 0 : i32
    %c0_i32_1 = arith.constant 0 : i32
    return %c0_i32, %c0_i32_0 : i32, i32
  }
  func.func @transform_3(%arg0: i32) -> (i32, i32, i32) {
    %c0_i32 = arith.constant 0 : i32
    %c0_i32_0 = arith.constant 0 : i32
    %c0_i32_1 = arith.constant 0 : i32
    return %arg0, %c0_i32, %c0_i32_0 : i32, i32, i32
  }
}

</mosaic_0001>

<bundles_post_ra>
// kernel: tpu_custom_call.1
= control target key start
LH: loop header
LB: loop body
LE: loop exit
PB: predicated region body
PF: predicated region fallthrough
CT: control target
= control target key end

     0   :  { %s3070_s12 = smov 0   ;;  %s4008_s0 = inlined_call_operand.vmem [shape: bf16[2,176,5], index: 0, kind: input, shape index: {}]   ;;  %s4009_s1 = inlined_call_operand.vmem [shape: bf16[9,5,16], index: 1, kind: input, shape index: {}]   ;;  %s4010_s2 = inlined_call_operand.vmem [shape: f32[1,16], index: 2, kind: input, shape index: {}]   ;;  %s4011_s3 = inlined_call_operand.vmem [shape: f32[2,144,16], index: 3, kind: output, shape index: {}]  }
   0x1 LB: > { %s2335_s13 = sadd.s32 4294967295, %s3045_s12   ;;  %p2339_p0 = scmp.ge.s32.totalorder %s3045_s12, 1  ;;  %s3045_s12 = sphi %s3070_s12, %s13_s12  }
   0x2   : > { %p137_p1 = scmp.lt.s32.totalorder %s3045_s12, 3 }
   0x4   : > { %p138_p2 = pnand %p2339_p0, %p137_p1 }
   0x5   : > { %p161_p3 = scmp.lt.s32.totalorder (!%p138_p2), %s2335_s13, 1 }
   0x6   : > { %141 = sbr.rel (%p138_p2) target bundleno = 584 (0x248), region = 32 }
   0xb   : > { %v2342_v0 = vld [vmem:[%s4009_s1 + $0x4] sm:$0x7]  ;;  %vm347_vm0 = vcmask 1041408   ;;  %vm348_vm1 = vcmask 1042432   ;;  %v3047_v1 = vmov 0.0   ;;  %v3048_v2 = vmov 65535  }
   0xc   : > { %2567 = vmatprep.subr.bf16.mxu0 %v3047_v1  ;;  %2909 = vmatprep.subr.bf16.mxu1 %v3047_v1  ;;  %v349_v3 = vsel %vm347_vm0, 4294967295, %v3048_v2  ;;  %vm3049_vm2 = vmmov 0   ;;  %s4013_s13 = smov (!%p161_p3, %s2335_s13), 1  ;;  %vm242_vm3 = vsmask.f32 7424  ;;  %vm319_vm4 = vcmask 39936  }
   0xd   : > { %v3083_v4 = vsel %vm348_vm1, %v349_v3, 0  ;;  %2569 = vmatprep.mubr.msk.bf16.mxu0 %vm3049_vm2, %v3047_v1  ;;  %2589 = vmatprep.mubr.msk.bf16.mxu1 %vm3049_vm2, %v3047_v1  ;;  %s2911_s16 = smul.u32 88, %s4013_s13  ;;  %v2371_v10 = vld [vmem:[%s4009_s1 + $0x8] sm:$0x7]  ;;  %v190_v16 = vld [vmem:[%s4009_s1] sm:$0x7] }
   0xe   : > { %v352_v5 = vand.u32 %v2342_v0, %v3083_v4  ;;  %v639_v27 = vand.u32 %v2371_v10, %v3083_v4  ;;  %v478_v30 = vand.u32 %v3083_v4, %v190_v16  ;;  %v2382_v10 = vld [vmem:[%s4009_s1 + $0xc] sm:$0x7]  ;;  %vm591_vm5 = vcmask 1046528   ;;  %s2912_s11 = smul.u32 144, %s4013_s13 }
   0xf   : > { %s3098_s19 = scalar_lea.vmem %s4008_s0, %s2911_s16  ;;  %vm1261_vm6 = vcmask 1044480   ;;  %vm833_vm7 = vcmask 1045504   ;;  %vm1012_vm8 = vsmask.f32 5376  ;;  %vm2261_vm9 = vcmask 130048  }
  0x10   : > { %2568 = vmatpush3.bf16.msra.mxu0 %v352_v5  ;;  %2910 = vmatpush3.bf16.msra.mxu1 %v352_v5  ;;  %v172_v6 = vld [vmem:[%s3098_s19] sm:$0xf]  ;;  %v3102_v7 = vld [vmem:[%s3098_s19 + $0x4] sm:$0xf]  ;;  %v3108_v9 = vld [vmem:[%s3098_s19 + $0x8] sm:$0xff]   ;;  %s3913_s13 = scalar_lea.vmem %s4011_s3, %s2912_s11 }
  0x11   : > { %2643 = vmatprep.subr.bf16.mxu0 %v3047_v1  ;;  %2605 = vmatprep.subr.bf16.mxu1 %v3047_v1  ;;  %v3105_v8 = vcombine.low %v172_v6, %v3102_v7  ;;  %v251_v13 = vshll.u32 %v3108_v9, 16  ;;  %v3117_v14 = vld [vmem:[%s3098_s19 + $0x28] sm:$0xff]   ;;  %v3120_v15 = vld [vmem:[%s3098_s19 + $0x30] sm:$0xff]   ;;  %v3129_v18 = vld [vmem:[%s3098_s19 + $0x38] sm:$0xff]   ;;  %v255_v24 = vshrl.u32 %v3108_v9, 16 }
  0x12   : > { %v3126_v17 = vld [vmem:[%s3098_s19 + $0x10] sm:$0xff]   ;;  %v283_v21 = vshll.u32 %v3117_v14, 16  ;;  %v287_v22 = vshrl.u32 %v3117_v14, 16  ;;  %v291_v23 = vshll.u32 %v3120_v15, 16  ;;  %v295_v33 = vshrl.u32 %v3120_v15, 16  ;;  %v3149_v38 = vld [vmem:[%s3098_s19 + $0x18] sm:$0xff]  }
  0x13   : > { %v244_v11 = vshrl.u32 %v3105_v8, 16  ;;  %v246_v12 = vshll.u32 %v3105_v8, 16  ;;  %v253_v20 = vrot.slane %v251_v13, 1  ;;  %v259_v28 = vshll.u32 %v3126_v17, 16  ;;  %v3156_v41 = vld [vmem:[%s3098_s19 + $0x40] sm:$0xff]  }
  0x14   : > { %v3135_v26 = vrot.slane %v283_v21, 1  ;;  %v293_v29 = vrot.slane %v291_v23, 1  ;;  %v299_v34 = vshll.u32 %v3129_v18, 16  ;;  %v263_v43 = vshrl.u32 %v3126_v17, 16  ;;  %v3169_v50 = vld [vmem:[%s3098_s19 + $0x20] sm:$0xff]  }
  0x15   : > { %v248_v19 = vrot.slane %v246_v12, 1  ;;  %v257_v36 = vor.u32 %v255_v24, %v253_v20  ;;  %v261_v37 = vrot.slane %v259_v28, 1  ;;  %v267_v44 = vshll.u32 %v3149_v38, 16  ;;  %v3175_v53 = vld [vmem:[%s3098_s19 + $0x48] ss:$0 sps:$4 sm:$0x11]  }
  0x16   : > { %v289_v32 = vor.u32 %v287_v22, %v3135_v26  ;;  %v297_v39 = vor.u32 %v295_v33, %v293_v29  ;;  %v301_v40 = vrot.slane %v299_v34, 1  ;;  %v303_v46 = vshrl.u32 %v3129_v18, 16  ;;  %v585_v6 = vld [vmem:[%s3098_s19] sm:$0xe]  ;;  %v765_v22 = vld [vmem:[%s3098_s19 + $0x8] sm:$0xf] }
  0x17   : > { %v249_v25 = vor.u32 %v248_v19, %v244_v11  ;;  %v262_v42 = vsel %vm242_vm3, %v257_v36, %v261_v37  ;;  %v307_v47 = vshll.u32 %v3156_v41, 16  ;;  %v265_v48 = vor.u32 %v263_v43, %v261_v37  ;;  %v1255_v23 = vld [vmem:[%s3098_s19 + $0x4] sm:$0x8] }
  0x18   : > { %v294_v35 = vsel %vm242_vm3, %v289_v32, %v293_v29  ;;  %v302_v45 = vsel %vm242_vm3, %v297_v39, %v301_v40  ;;  %v269_v49 = vrot.slane %v267_v44, 1  ;;  %v305_v51 = vor.u32 %v303_v46, %v301_v40  ;;  %v3241_v29 = vld [vmem:[%s3098_s19 + $0x14] sm:$0xff]   ;;  %v3281_v40 = vld [vmem:[%s3098_s19 + $0x24] sm:$0xff]   ;;  %v3297_v46 = vld [vmem:[%s3098_s19 + $0x2c] sm:$0xff]  }
  0x19   : > { %v254_v31 = vsel %vm242_vm3, %v249_v25, %v253_v20  ;;  %2590 = vmatmul.mubr.msk.bf16.vlgmr.msra.gmra.mxu1 %vm319_vm4, %v294_v35  ;;  %v309_v52 = vrot.slane %v307_v47, 1  ;;  %v271_v55 = vshrl.u32 %v3149_v38, 16  ;;  %v275_v56 = vshll.u32 %v3169_v50, 16  ;;  %v3233_v25 = vld [vmem:[%s3098_s19 + $0xc] sm:$0xff]   ;;  %v3265_v35 = vld [vmem:[%s3098_s19 + $0x1c] sm:$0xff]  }
  0x1a   : > { %2570 = vmatmul.mubr.msk.bf16.vlgmr.msra.gmra.mxu0 %vm319_vm4, %v254_v31  ;;  %2606 = vmatpush3.bf16.msra.mxu1 %v478_v30  ;;  %v270_v54 = vsel %vm242_vm3, %v265_v48, %v269_v49  ;;  %v311_v58 = vshrl.u32 %v3156_v41, 16  ;;  %v315_v59 = vshll.u32 %v3175_v53, 16  ;;  %v279_v2 = vshrl.u32 %v3169_v50, 16 }
  0x1b   : > { %2644 = vmatpush3.bf16.msra.mxu0 %v639_v27  ;;  %2573 = vmatprep.mubr.msk.bf16.mxu0 %vm3049_vm2, %v3047_v1  ;;  %v310_v57 = vsel %vm242_vm3, %v305_v51, %v309_v52  ;;  %v273_v60 = vor.u32 %v271_v55, %v269_v49  ;;  %v277_v61 = vrot.slane %v275_v56, 1  ;;  %v2372_v12 = vcombine.low %v585_v6, %v3102_v7  ;;  %v2402_v7 = vld [vmem:[%s4009_s1 + $0x10] sm:$0x7]  ;;  %v764_v51 = vld [vmem:[%s3098_s19 + $0x4] sm:$0xc] }
  0x1c   : > { %2719 = vmatprep.subr.bf16.mxu0 %v3047_v1  ;;  %2593 = vmatprep.mubr.msk.bf16.mxu1 %vm3049_vm2, %v3047_v1  ;;  %v313_v62 = vor.u32 %v311_v58, %v309_v52  ;;  %v317_v63 = vrot.slane %v315_v59, 1  ;;  %v881_v13 = vand.u32 %v2382_v10, %v3083_v4  ;;  %v593_v19 = vrot.slane %v3108_v9, 1 }
  0x1d   : > { %2681 = vmatprep.subr.bf16.mxu1 %v3047_v1  ;;  %v278_v0 = vsel %vm242_vm3, %v273_v60, %v277_v61  ;;  %v281_v5 = vor.u32 %v279_v2, %v277_v61  ;;  %v592_v16 = vrot.slane %v2372_v12, 1  ;;  %v1130_v21 = vand.u32 %v2402_v7, %v3083_v4  ;;  %v2413_v60 = vld [vmem:[%s4009_s1 + $0x14] sm:$0x7] }
  0x1e   : > { %v318_v3 = vsel %vm242_vm3, %v313_v62, %v317_v63  ;;  %v1263_v28 = vrot.slane %v3233_v25, 3  ;;  %v1265_v31 = vrot.slane %v3241_v29, 3  ;;  %v599_v34 = vrot.slane %v3169_v50, 1 }
  0x1f   : > { %v286_v11 = vsel %vm242_vm3, %v281_v5, %v3135_v26  ;;  %v594_v20 = vsel %vm591_vm5, %v592_v16, %v593_v19  ;;  %v2414_v26 = vcombine.low %v1255_v23, %v765_v22  ;;  %v1267_v36 = vrot.slane %v3265_v35, 3 }
  0x20   : > { %v3253_v33 = vsel %vm1261_vm6, %v1263_v28, %v1265_v31  ;;  %v601_v37 = vrot.slane %v3117_v14, 1  ;;  %v603_v43 = vrot.slane %v3120_v15, 1  ;;  %v1271_v47 = vrot.slane %v3297_v46, 3 }
  0x21   : > { %2594 = vmatmul.mubr.msk.bf16.gmra.mxu1 %vm319_vm4, %v302_v45  ;;  %v1262_v27 = vrot.slane %v2414_v26, 3  ;;  %v3273_v39 = vsel %vm1261_vm6, %v1265_v31, %v1267_v36  ;;  %v605_v48 = vrot.slane %v3129_v18, 1  ;;  %v2383_v52 = vcombine.low %v764_v51, %v765_v22 }
  0x22   : > { %2574 = vmatmul.mubr.msk.bf16.gmra.mxu0 %vm319_vm4, %v262_v42  ;;  %2597 = vmatprep.mubr.msk.bf16.mxu1 %vm3049_vm2, %v3047_v1  ;;  %v1269_v42 = vrot.slane %v3281_v40, 3  ;;  %v604_v45 = vsel %vm591_vm5, %v601_v37, %v603_v43  ;;  %v835_v59 = vrot.slane %v3233_v25, 2  ;;  %v1031_v6 = vshrl.u32 %v3241_v29, 16 }
  0x23   : > { %2577 = vmatprep.mubr.msk.bf16.mxu0 %vm3049_vm2, %v3047_v1  ;;  %v3244_v30 = vsel %vm1261_vm6, %v1262_v27, %v1263_v28  ;;  %v606_v49 = vsel %vm591_vm5, %v603_v43, %v605_v48  ;;  %v1014_v55 = vshrl.u32 %v2383_v52, 16  ;;  %v1017_v56 = vshll.u32 %v2383_v52, 16 }
  0x24   : > { %v3289_v44 = vsel %vm1261_vm6, %v1267_v36, %v1269_v42  ;;  %v834_v58 = vrot.slane %v2383_v52, 2  ;;  %v1034_v10 = vshll.u32 %v3241_v29, 16  ;;  %v837_v12 = vrot.slane %v3241_v29, 2 }
  0x25   : > { %v1016_v61 = vrot.slane %v1014_v55, 2  ;;  %v1019_v62 = vrot.slane %v1017_v56, 3  ;;  %v1043_v22 = vshll.u32 %v3265_v35, 16  ;;  %v839_v23 = vrot.slane %v3265_v35, 2 }
  0x26   : > { %v836_v2 = vsel %vm833_vm7, %v834_v58, %v835_v59  ;;  %v1036_v7 = vrot.slane %v1034_v10, 3  ;;  %v1052_v29 = vshll.u32 %v3281_v40, 16  ;;  %v841_v31 = vrot.slane %v3281_v40, 2 }
  0x27   : > { %v1045_v26 = vrot.slane %v1043_v22, 3  ;;  %v840_v27 = vsel %vm833_vm7, %v837_v12, %v839_v23 }
  0x29   : > { %2598 = vmatmul.mubr.msk.bf16.gmra.mxu1 %vm319_vm4, %v310_v57  ;;  %v1022_v57 = vshrl.u32 %v3233_v25, 16 }
  0x2a   : > { %2578 = vmatmul.mubr.msk.bf16.gmra.mxu0 %vm319_vm4, %v270_v54  ;;  %2601 = vmatprep.mubr.msk.bf16.mxu1 %vm3049_vm2, %v3047_v1  ;;  %v609_v54 = vrot.slane %v3175_v53, 1 }
  0x2b   : > { %2581 = vmatprep.mubr.msk.bf16.mxu0 %vm3049_vm2, %v3047_v1  ;;  %v1024_v63 = vrot.slane %v1022_v57, 2 }
  0x31   : > { %2602 = vmatmul.mubr.msk.bf16.gmra.mxu1 %vm319_vm4, %v318_v3  ;;  %v1020_v3 = vor.u32 %v1019_v62, %v1016_v61 }
  0x32   : > { %2582 = vmatmul.mubr.msk.bf16.gmra.mxu0 %vm319_vm4, %v278_v0  ;;  %2607 = vmatprep.mubr.msk.bf16.mxu1 %vm3049_vm2, %v3047_v1 }
  0x33   : > { %2585 = vmatprep.mubr.msk.bf16.mxu0 %vm3049_vm2, %v3047_v1 }
  0x39   : > { %2608 = vmatmul.mubr.msk.bf16.vlgmr.msra.gmra.mxu1 %vm319_vm4, %v3105_v8  ;;  %v595_v8 = vrot.slane %v3126_v17, 1 }
  0x3a   : > { %2586 = vmatmul.mubr.msk.bf16.gmra.mxu0 %vm319_vm4, %v286_v11  ;;  %2682 = vmatpush3.bf16.msra.mxu1 %v881_v13  ;;  %v2424_v11 = vld [vmem:[%s4009_s1 + $0x18] sm:$0x7] }
  0x3b   : > { %2645 = vmatprep.mubr.msk.bf16.mxu0 %vm3049_vm2, %v3047_v1  ;;  %2611 = vmatprep.mubr.msk.bf16.mxu1 %vm3049_vm2, %v3047_v1  ;;  %v596_v24 = vsel %vm591_vm5, %v593_v19, %v595_v8  ;;  %v1527_v16 = vand.u32 %v2424_v11, %v3083_v4  ;;  %v1033_v19 = vrot.slane %v1031_v6, 2 }
  0x3c   : > { %2757 = vmatprep.subr.bf16.mxu1 %v3047_v1 }
  0x41   : > { %2612 = vmatmul.mubr.msk.bf16.gmra.mxu1 %vm319_vm4, %v3108_v9  ;;  %v597_v9 = vrot.slane %v3149_v38, 1 }
  0x42   : > { %2646 = vmatmul.mubr.msk.bf16.vlgmr.msra.gmra.mxu0 %vm319_vm4, %v594_v20  ;;  %2615 = vmatprep.mubr.msk.bf16.mxu1 %vm3049_vm2, %v3047_v1  ;;  %v838_v20 = vsel %vm833_vm7, %v835_v59, %v837_v12 }
  0x43   : > { %2720 = vmatpush3.bf16.msra.mxu0 %v1130_v21  ;;  %2649 = vmatprep.mubr.msk.bf16.mxu0 %vm3049_vm2, %v3047_v1  ;;  %v598_v32 = vsel %vm591_vm5, %v595_v8, %v597_v9  ;;  %v1037_v21 = vor.u32 %v1036_v7, %v1033_v19  ;;  %v1040_v8 = vshrl.u32 %v3265_v35, 16  ;;  %v842_v35 = vsel %vm833_vm7, %v839_v23, %v841_v31  ;;  %v2944_v19 = vld [vmem:[%s3098_s19 + $0x4c] ss:$0 sps:$4 sm:$0x33]  }
  0x44   : > { %2795 = vmatprep.subr.bf16.mxu0 %v3047_v1 }
  0x49   : > { %2616 = vmatmul.mubr.msk.bf16.gmra.mxu1 %vm319_vm4, %v3126_v17  ;;  %v600_v17 = vsel %vm591_vm5, %v597_v9, %v599_v34  ;;  %v1049_v9 = vshrl.u32 %v3281_v40, 16  ;;  %v843_v40 = vrot.slane %v3297_v46, 2 }
  0x4a   : > { %2650 = vmatmul.mubr.msk.bf16.gmra.mxu0 %vm319_vm4, %v596_v24  ;;  %2619 = vmatprep.mubr.msk.bf16.mxu1 %vm3049_vm2, %v3047_v1 }
  0x4b   : > { %2653 = vmatprep.mubr.msk.bf16.mxu0 %vm3049_vm2, %v3047_v1 }
  0x51   : > { %2620 = vmatmul.mubr.msk.bf16.gmra.mxu1 %vm319_vm4, %v3149_v38  ;;  %v602_v38 = vsel %vm591_vm5, %v599_v34, %v601_v37  ;;  %v1051_v34 = vrot.slane %v1049_v9, 2  ;;  %v1058_v37 = vshrl.u32 %v3297_v46, 16 }
  0x52   : > { %2654 = vmatmul.mubr.msk.bf16.gmra.mxu0 %vm319_vm4, %v598_v32  ;;  %2623 = vmatprep.mubr.msk.bf16.mxu1 %vm3049_vm2, %v3047_v1 }
  0x53   : > { %2657 = vmatprep.mubr.msk.bf16.mxu0 %vm3049_vm2, %v3047_v1  ;;  %v1060_v43 = vrot.slane %v1058_v37, 2 }
  0x59   : > { %2624 = vmatmul.mubr.msk.bf16.gmra.mxu1 %vm319_vm4, %v3169_v50  ;;  %v607_v50 = vrot.slane %v3156_v41, 1 }
  0x5a   : > { %2658 = vmatmul.mubr.msk.bf16.gmra.mxu0 %vm319_vm4, %v600_v17  ;;  %2627 = vmatprep.mubr.msk.bf16.mxu1 %vm3049_vm2, %v3047_v1  ;;  %v1054_v17 = vrot.slane %v1052_v29, 3  ;;  %v2463_v29 = vld [vmem:[%s4009_s1 + $0x20] sm:$0x7] }
  0x5b   : > { %2661 = vmatprep.mubr.msk.bf16.mxu0 %vm3049_vm2, %v3047_v1  ;;  %v610_v53 = vsel %vm591_vm5, %v607_v50, %v609_v54 }
  0x5c   : > { %v1055_v36 = vor.u32 %v1054_v17, %v1051_v34 }
  0x61   : > { %2628 = vmatmul.mubr.msk.bf16.gmra.mxu1 %vm319_vm4, %v3117_v14  ;;  %v3307_v14 = vsel %vm1261_vm6, %v1269_v42, %v1271_v47 }
  0x62   : > { %2662 = vmatmul.mubr.msk.bf16.gmra.mxu0 %vm319_vm4, %v602_v38  ;;  %2631 = vmatprep.mubr.msk.bf16.mxu1 %vm3049_vm2, %v3047_v1  ;;  %v1061_v38 = vshll.u32 %v3297_v46, 16 }
  0x63   : > { %2665 = vmatprep.mubr.msk.bf16.mxu0 %vm3049_vm2, %v3047_v1 }
  0x69   : > { %2632 = vmatmul.mubr.msk.bf16.gmra.mxu1 %vm319_vm4, %v3120_v15  ;;  %v608_v15 = vsel %vm591_vm5, %v605_v48, %v607_v50  ;;  %v844_v48 = vsel %vm833_vm7, %v841_v31, %v843_v40  ;;  %v2947_v31 = vld [vmem:[%s3098_s19 + $0xc] sm:$0xff]  }
  0x6a   : > { %2666 = vmatmul.mubr.msk.bf16.gmra.mxu0 %vm319_vm4, %v604_v45  ;;  %2635 = vmatprep.mubr.msk.bf16.mxu1 %vm3049_vm2, %v3047_v1  ;;  %v1063_v45 = vrot.slane %v1061_v38, 3 }
  0x6b   : > { %2669 = vmatprep.mubr.msk.bf16.mxu0 %vm3049_vm2, %v3047_v1 }
  0x6c   : > { %v1064_v50 = vor.u32 %v1063_v45, %v1060_v43 }
  0x6e   : > { %v1065_v54 = vsel %vm1012_vm8, %v1055_v36, %v1064_v50 }
  0x71   : > { %2636 = vmatmul.mubr.msk.bf16.gmra.mxu1 %vm319_vm4, %v3129_v18  ;;  %v1025_v18 = vshll.u32 %v3233_v25, 16  ;;  %v1042_v25 = vrot.slane %v1040_v8, 2  ;;  %v851_v8 = vrot.slane %v2944_v19, 2 }
  0x72   : > { %2670 = vmatmul.mubr.msk.bf16.gmra.mxu0 %vm319_vm4, %v606_v49  ;;  %2639 = vmatprep.mubr.msk.bf16.mxu1 %vm3049_vm2, %v3047_v1  ;;  %v3392_v49 = vld [vmem:[%s3098_s19 + $0x34] sm:$0xff]  }
  0x73   : > { %2673 = vmatprep.mubr.msk.bf16.mxu0 %vm3049_vm2, %v3047_v1  ;;  %v1027_v0 = vrot.slane %v1025_v18, 3  ;;  %v1046_v28 = vor.u32 %v1045_v26, %v1042_v25  ;;  %v1067_v51 = vshrl.u32 %v3392_v49, 16  ;;  %v845_v52 = vrot.slane %v3392_v49, 2  ;;  %v3406_v18 = vld [vmem:[%s3098_s19 + $0x3c] sm:$0xff]  }
  0x74   : > { %v1076_v59 = vshrl.u32 %v3406_v18, 16  ;;  %v1275_v46 = vrot.slane %v3406_v18, 3 }
  0x75   : > { %v1028_v5 = vor.u32 %v1027_v0, %v1024_v63  ;;  %v1047_v32 = vsel %vm1012_vm8, %v1037_v21, %v1046_v28  ;;  %v1056_v42 = vsel %vm1012_vm8, %v1046_v28, %v1055_v36  ;;  %v1069_v55 = vrot.slane %v1067_v51, 2  ;;  %v2949_v36 = vld [vmem:[%s3098_s19 + $0x1c] sm:$0xff]  }
  0x76   : > { %v846_v57 = vsel %vm833_vm7, %v843_v40, %v845_v52  ;;  %v1078_v62 = vrot.slane %v1076_v59, 2  ;;  %v2951_v59 = vld [vmem:[%s3098_s19 + $0x2c] sm:$0xff]  }
  0x77   : > { %v1029_v13 = vsel %vm1012_vm8, %v1020_v3, %v1028_v5  ;;  %v1038_v24 = vsel %vm1012_vm8, %v1028_v5, %v1037_v21 }
  0x79   : > { %2640 = vmatmul.mubr.msk.bf16.gmra.mxu1 %vm319_vm4, %v3156_v41  ;;  %v1309_v41 = vand.u32 %v2413_v60, %v3083_v4  ;;  %v847_v60 = vrot.slane %v3406_v18, 2 }
  0x7a   : > { %2674 = vmatmul.mubr.msk.bf16.gmra.mxu0 %vm319_vm4, %v608_v15  ;;  %2683 = vmatprep.mubr.msk.bf16.mxu1 %vm3049_vm2, %v3047_v1  ;;  %v1070_v15 = vshll.u32 %v3392_v49, 16 }
  0x7b   : > { %2677 = vmatprep.mubr.msk.bf16.mxu0 %vm3049_vm2, %v3047_v1  ;;  %v848_v0 = vsel %vm833_vm7, %v845_v52, %v847_v60 }
  0x7c   : > { %v1072_v56 = vrot.slane %v1070_v15, 3 }
  0x7e   : > { %v1073_v58 = vor.u32 %v1072_v56, %v1069_v55  ;;  %v1273_v56 = vrot.slane %v3392_v49, 3 }
  0x80   : > { %v1074_v61 = vsel %vm1012_vm8, %v1064_v50, %v1073_v58  ;;  %v2950_v50 = vld [vmem:[%s3098_s19 + $0x24] sm:$0xff]  }
  0x81   : > { %2684 = vmatmul.mubr.msk.bf16.vlgmr.msra.gmra.mxu1 %vm319_vm4, %v836_v2  ;;  %v3420_v2 = vld [vmem:[%s3098_s19 + $0x44] sm:$0xff]  }
  0x82   : > { %2678 = vmatmul.mubr.msk.bf16.gmra.mxu0 %vm319_vm4, %v610_v53  ;;  %2758 = vmatpush3.bf16.msra.mxu1 %v1309_v41  ;;  %v1079_v53 = vshll.u32 %v3406_v18, 16  ;;  %v1085_v3 = vshrl.u32 %v3420_v2, 16  ;;  %v1088_v5 = vshll.u32 %v3420_v2, 16  ;;  %v849_v6 = vrot.slane %v3420_v2, 2 }
  0x83   : > { %2721 = vmatprep.mubr.msk.bf16.mxu0 %vm3049_vm2, %v3047_v1  ;;  %2687 = vmatprep.mubr.msk.bf16.mxu1 %vm3049_vm2, %v3047_v1  ;;  %v1277_v19 = vrot.slane %v3420_v2, 3 }
  0x84   : > { %2833 = vmatprep.subr.bf16.mxu1 %v3047_v1  ;;  %v1081_v63 = vrot.slane %v1079_v53, 3  ;;  %v1087_v11 = vrot.slane %v1085_v3, 2  ;;  %v1090_v12 = vrot.slane %v1088_v5, 3  ;;  %v852_v25 = vsel %vm833_vm7, %v849_v6, %v851_v8  ;;  %v1652_v8 = vld [vmem:[%s3098_s19 + $0xc] sm:$0xf] }
  0x86   : > { %v1082_v41 = vor.u32 %v1081_v63, %v1078_v62  ;;  %v1091_v7 = vor.u32 %v1090_v12, %v1087_v11 }
  0x88   : > { %v1083_v10 = vsel %vm1012_vm8, %v1073_v58, %v1082_v41  ;;  %v1092_v22 = vsel %vm1012_vm8, %v1082_v41, %v1091_v7  ;;  %v2952_v41 = vld [vmem:[%s3098_s19 + $0x34] sm:$0xff]  }
  0x89   : > { %2688 = vmatmul.mubr.msk.bf16.gmra.mxu1 %vm319_vm4, %v838_v20 }
  0x8a   : > { %2722 = vmatmul.mubr.msk.bf16.vlgmr.msra.gmra.mxu0 %vm319_vm4, %v1029_v13  ;;  %2691 = vmatprep.mubr.msk.bf16.mxu1 %vm3049_vm2, %v3047_v1  ;;  %v3433_v13 = vld [vmem:[%s3098_s19 + $0x4c] ss:$0 sps:$4 sm:$0x77]  }
  0x8b   : > { %2796 = vmatpush3.bf16.msra.mxu0 %v1527_v16  ;;  %2725 = vmatprep.mubr.msk.bf16.mxu0 %vm3049_vm2, %v3047_v1  ;;  %v850_v16 = vsel %vm833_vm7, %v847_v60, %v849_v6  ;;  %v1094_v20 = vshrl.u32 %v3433_v13, 16  ;;  %v1097_v21 = vshll.u32 %v3433_v13, 16  ;;  %v1276_v6 = vsel %vm1261_vm6, %v1273_v56, %v1275_v46 }
  0x8c   : > { %2871 = vmatprep.subr.bf16.mxu0 %v3047_v1 }
  0x8d   : > { %v1096_v23 = vrot.slane %v1094_v20, 2 }
  0x91   : > { %2692 = vmatmul.mubr.msk.bf16.gmra.mxu1 %vm319_vm4, %v840_v27  ;;  %v2443_v27 = vld [vmem:[%s4009_s1 + $0x1c] sm:$0x7] }
  0x92   : > { %2726 = vmatmul.mubr.msk.bf16.gmra.mxu0 %vm319_vm4, %v1038_v24  ;;  %2695 = vmatprep.mubr.msk.bf16.mxu1 %vm3049_vm2, %v3047_v1  ;;  %v1099_v24 = vrot.slane %v1097_v21, 3  ;;  %v1825_v9 = vand.u32 %v2443_v27, %v3083_v4  ;;  %v2953_v21 = vld [vmem:[%s3098_s19 + $0x3c] sm:$0xff]  }
  0x93   : > { %2729 = vmatprep.mubr.msk.bf16.mxu0 %vm3049_vm2, %v3047_v1 }
  0x94   : > { %v1100_v26 = vor.u32 %v1099_v24, %v1096_v23 }
  0x96   : > { %v1101_v28 = vsel %vm1012_vm8, %v1091_v7, %v1100_v26  ;;  %v1278_v26 = vsel %vm1261_vm6, %v1275_v46, %v1277_v19 }
  0x99   : > { %2696 = vmatmul.mubr.msk.bf16.gmra.mxu1 %vm319_vm4, %v842_v35 }
  0x9a   : > { %2730 = vmatmul.mubr.msk.bf16.gmra.mxu0 %vm319_vm4, %v1047_v32  ;;  %2699 = vmatprep.mubr.msk.bf16.mxu1 %vm3049_vm2, %v3047_v1  ;;  %v2003_v32 = vand.u32 %v2463_v29, %v3083_v4 }
  0x9b   : > { %2733 = vmatprep.mubr.msk.bf16.mxu0 %vm3049_vm2, %v3047_v1 }
  0xa1   : > { %2700 = vmatmul.mubr.msk.bf16.gmra.mxu1 %vm319_vm4, %v844_v48 }
  0xa2   : > { %2734 = vmatmul.mubr.msk.bf16.gmra.mxu0 %vm319_vm4, %v1056_v42  ;;  %2703 = vmatprep.mubr.msk.bf16.mxu1 %vm3049_vm2, %v3047_v1 }
  0xa3   : > { %2737 = vmatprep.mubr.msk.bf16.mxu0 %vm3049_vm2, %v3047_v1 }
  0xa9   : > { %2704 = vmatmul.mubr.msk.bf16.gmra.mxu1 %vm319_vm4, %v846_v57 }
  0xaa   : > { %2738 = vmatmul.mubr.msk.bf16.gmra.mxu0 %vm319_vm4, %v1065_v54  ;;  %2707 = vmatprep.mubr.msk.bf16.mxu1 %vm3049_vm2, %v3047_v1 }
  0xab   : > { %2741 = vmatprep.mubr.msk.bf16.mxu0 %vm3049_vm2, %v3047_v1 }
  0xb1   : > { %2708 = vmatmul.mubr.msk.bf16.gmra.mxu1 %vm319_vm4, %v848_v0 }
  0xb2   : > { %2742 = vmatmul.mubr.msk.bf16.gmra.mxu0 %vm319_vm4, %v1074_v61  ;;  %2711 = vmatprep.mubr.msk.bf16.mxu1 %vm3049_vm2, %v3047_v1  ;;  %v1274_v61 = vsel %vm1261_vm6, %v1271_v47, %v1273_v56 }
  0xb3   : > { %2745 = vmatprep.mubr.msk.bf16.mxu0 %vm3049_vm2, %v3047_v1 }
  0xb9   : > { %2712 = vmatmul.mubr.msk.bf16.gmra.mxu1 %vm319_vm4, %v850_v16 }
  0xba   : > { %2746 = vmatmul.mubr.msk.bf16.gmra.mxu0 %vm319_vm4, %v1083_v10  ;;  %2715 = vmatprep.mubr.msk.bf16.mxu1 %vm3049_vm2, %v3047_v1 }
  0xbb   : > { %2749 = vmatprep.mubr.msk.bf16.mxu0 %vm3049_vm2, %v3047_v1 }
  0xc1   : > { %2716 = vmatmul.mubr.msk.bf16.gmra.mxu1 %vm319_vm4, %v852_v25 }
  0xc2   : > { %2750 = vmatmul.mubr.msk.bf16.gmra.mxu0 %vm319_vm4, %v1092_v22  ;;  %2759 = vmatprep.mubr.msk.bf16.mxu1 %vm3049_vm2, %v3047_v1  ;;  %v1653_v22 = vld [vmem:[%s3098_s19 + $0x10] sm:$0xf] }
  0xc3   : > { %2753 = vmatprep.mubr.msk.bf16.mxu0 %vm3049_vm2, %v3047_v1  ;;  %v2444_v27 = vcombine.low %v1652_v8, %v1653_v22 }
  0xc9   : > { %2760 = vmatmul.mubr.msk.bf16.vlgmr.msra.gmra.mxu1 %vm319_vm4, %v3244_v30  ;;  %v2948_v30 = vld [vmem:[%s3098_s19 + $0x14] sm:$0xff]  }
  0xca   : > { %2754 = vmatmul.mubr.msk.bf16.gmra.mxu0 %vm319_vm4, %v1101_v28  ;;  %2834 = vmatpush3.bf16.msra.mxu1 %v1825_v9 }
  0xcb   : > { %2797 = vmatprep.mubr.msk.bf16.mxu0 %vm3049_vm2, %v3047_v1  ;;  %2763 = vmatprep.mubr.msk.bf16.mxu1 %vm3049_vm2, %v3047_v1 }
  0xd1   : > { %2764 = vmatmul.mubr.msk.bf16.gmra.mxu1 %vm319_vm4, %v3253_v33 }
  0xd2   : > { %2798 = vmatmul.mubr.msk.bf16.vlgmr.msra.gmra.mxu0 %vm319_vm4, %v2947_v31  ;;  %2767 = vmatprep.mubr.msk.bf16.mxu1 %vm3049_vm2, %v3047_v1 }
  0xd3   : > { %2872 = vmatpush3.bf16.msra.mxu0 %v2003_v32  ;;  %2801 = vmatprep.mubr.msk.bf16.mxu0 %vm3049_vm2, %v3047_v1  ;;  %v1279_v32 = vrot.slane %v3433_v13, 3 }
  0xd9   : > { %v3481_v4 = vpop.f32.mrf.mxu1  ;;  %2768 = vmatmul.mubr.msk.bf16.gmra.mxu1 %vm319_vm4, %v3273_v39 }
  0xda   : > { %v388_v34 = vpop.f32.mrf.mxu0  ;;  %2802 = vmatmul.mubr.msk.bf16.gmra.mxu0 %vm319_vm4, %v2948_v30  ;;  %2771 = vmatprep.mubr.msk.bf16.mxu1 %vm3049_vm2, %v3047_v1 }
  0xdb   : > { %2805 = vmatprep.mubr.msk.bf16.mxu0 %vm3049_vm2, %v3047_v1  ;;  %v2591_v33 = vpop.f32.mrf.mxu1 }
  0xdc   : > { %v2571_v17 = vpop.f32.mrf.mxu0 }
  0xdd   : > { %v3490_v37 = vpop.f32.mrf.mxu1  ;;  %v1724_v17 = vshll.u32 %v2444_v27, 16 }
  0xde   : > { %v3487_v35 = vpop.f32.mrf.mxu0 }
  0xdf   : > { %v2592_v40 = vpop.f32.mrf.mxu1 }
  0xe0   : > { %v2572_v38 = vpop.f32.mrf.mxu0 }
  0xe1   : > { %v3497_v39 = vpop.f32.mrf.mxu1  ;;  %2772 = vmatmul.mubr.msk.bf16.gmra.mxu1 %vm319_vm4, %v3289_v44 }
  0xe2   : > { %v3492_v42 = vpop.f32.mrf.mxu0  ;;  %2806 = vmatmul.mubr.msk.bf16.gmra.mxu0 %vm319_vm4, %v2949_v36  ;;  %2775 = vmatprep.mubr.msk.bf16.mxu1 %vm3049_vm2, %v3047_v1  ;;  %v2954_v36 = vld [vmem:[%s3098_s19 + $0x44] sm:$0xff]  }
  0xe3   : > { %2809 = vmatprep.mubr.msk.bf16.mxu0 %vm3049_vm2, %v3047_v1  ;;  %v2595_v45 = vpop.f32.mrf.mxu1 }
  0xe4   : > { %v2575_v43 = vpop.f32.mrf.mxu0  ;;  %v1280_v45 = vsel %vm1261_vm6, %v1277_v19, %v1279_v32 }
  0xe5   : > { %v3506_v51 = vpop.f32.mrf.mxu1 }
  0xe6   : > { %v3503_v48 = vpop.f32.mrf.mxu0 }
  0xe7   : > { %v2596_v52 = vpop.f32.mrf.mxu1 }
  0xe8   : > { %v2576_v15 = vpop.f32.mrf.mxu0 }
  0xe9   : > { %v3513_v44 = vpop.f32.mrf.mxu1  ;;  %2776 = vmatmul.mubr.msk.bf16.gmra.mxu1 %vm319_vm4, %v3307_v14 }
  0xea   : > { %v3508_v54 = vpop.f32.mrf.mxu0  ;;  %2810 = vmatmul.mubr.msk.bf16.gmra.mxu0 %vm319_vm4, %v2950_v50  ;;  %2779 = vmatprep.mubr.msk.bf16.mxu1 %vm3049_vm2, %v3047_v1  ;;  %v1722_v50 = vshrl.u32 %v2444_v27, 16 }
  0xeb   : > { %2813 = vmatprep.mubr.msk.bf16.mxu0 %vm3049_vm2, %v3047_v1  ;;  %v2599_v57 = vpop.f32.mrf.mxu1 }
  0xec   : > { %v2579_v55 = vpop.f32.mrf.mxu0 }
  0xed   : > { %v3523_v53 = vpop.f32.mrf.mxu1 }
  0xee   : > { %v3520_v58 = vpop.f32.mrf.mxu0 }
  0xef   : > { %v2600_v62 = vpop.f32.mrf.mxu1 }
  0xf0   : > { %v2580_v60 = vpop.f32.mrf.mxu0 }
  0xf1   : > { %v3533_v49 = vpop.f32.mrf.mxu1  ;;  %2780 = vmatmul.mubr.msk.bf16.gmra.mxu1 %vm319_vm4, %v1274_v61 }
  0xf2   : > { %v3528_v14 = vpop.f32.mrf.mxu0  ;;  %2814 = vmatmul.mubr.msk.bf16.gmra.mxu0 %vm319_vm4, %v2951_v59  ;;  %2783 = vmatprep.mubr.msk.bf16.mxu1 %vm3049_vm2, %v3047_v1 }
  0xf3   : > { %2817 = vmatprep.mubr.msk.bf16.mxu0 %vm3049_vm2, %v3047_v1  ;;  %v2603_v0 = vpop.f32.mrf.mxu1 }
  0xf4   : > { %v2583_v63 = vpop.f32.mrf.mxu0 }
  0xf5   : > { %v3542_v3 = vpop.f32.mrf.mxu1  ;;  %v3591_v63 = vld [vmem:[%s3098_s19 + $0x1c] sm:$0xff]  }
  0xf6   : > { %v3539_v47 = vpop.f32.mrf.mxu0  ;;  %v1737_v19 = vshll.u32 %v3591_v63, 16 }
  0xf7   : > { %v2604_v10 = vpop.f32.mrf.mxu1 }
  0xf8   : > { %v2584_v5 = vpop.f32.mrf.mxu0  ;;  %v1739_v27 = vrot.slane %v1737_v19, 1 }
  0xf9   : > { %v514_v18 = vpop.f32.mrf.mxu1  ;;  %2784 = vmatmul.mubr.msk.bf16.gmra.mxu1 %vm319_vm4, %v1276_v6 }
  0xfa   : > { %v3545_v11 = vpop.f32.mrf.mxu0  ;;  %2818 = vmatmul.mubr.msk.bf16.gmra.mxu0 %vm319_vm4, %v2952_v41  ;;  %v515_v16 = vadd.f32 %v514_v18, %v388_v34  ;;  %2787 = vmatprep.mubr.msk.bf16.mxu1 %vm3049_vm2, %v3047_v1  ;;  %v3572_v34 = vld [vmem:[%s3098_s19 + $0x14] sm:$0xff]   ;;  %v2955_v41 = vld [vmem:[%s3098_s19 + $0x4c] sm:$0xff]  }
  0xfb   : > { %2821 = vmatprep.mubr.msk.bf16.mxu0 %vm3049_vm2, %v3047_v1  ;;  %v2609_v7 = vpop.f32.mrf.mxu1  ;;  %v1729_v15 = vshll.u32 %v3572_v34, 16 }
  0xfc   : > { %v2587_v12 = vpop.f32.mrf.mxu0 }
  0xfd   : > { %v517_v23 = vpop.f32.mrf.mxu1  ;;  %v1731_v62 = vrot.slane %v1729_v15, 1 }
  0xfe   : > { %v3554_v20 = vpop.f32.mrf.mxu0  ;;  %v518_v25 = vadd.f32 %v517_v23, %v3487_v35  ;;  %v1957_v23 = vrot.slane %v3572_v34, 1 }
  0xff   : > { %v2610_v28 = vpop.f32.mrf.mxu1 }
 0x100   : > { %v2588_v24 = vpop.f32.mrf.mxu0  ;;  %v3611_v28 = vld [vmem:[%s3098_s19 + $0x24] sm:$0xff]  }
 0x101   : > { %v522_v29 = vpop.f32.mrf.mxu1  ;;  %2788 = vmatmul.mubr.msk.bf16.gmra.mxu1 %vm319_vm4, %v1278_v26 }
 0x102   : > { %v675_v9 = vpop.f32.mrf.mxu0  ;;  %2822 = vmatmul.mubr.msk.bf16.gmra.mxu0 %vm319_vm4, %v2953_v21  ;;  %v523_v30 = vadd.f32 %v522_v29, %v3492_v42  ;;  %2791 = vmatprep.mubr.msk.bf16.mxu1 %vm3049_vm2, %v3047_v1  ;;  %v1726_v42 = vrot.slane %v1724_v17, 1 }
 0x103   : > { %v3562_v2 = vadd.f32 %v675_v9, %v515_v16  ;;  %2825 = vmatprep.mubr.msk.bf16.mxu0 %vm3049_vm2, %v3047_v1  ;;  %v2613_v33 = vpop.f32.mrf.mxu1 }
 0x104   : > { %v2647_v31 = vpop.f32.mrf.mxu0  ;;  %v1727_v61 = vor.u32 %v1726_v42, %v1722_v50 }
 0x105   : > { %v525_v40 = vpop.f32.mrf.mxu1 }
 0x106   : > { %v678_v35 = vpop.f32.mrf.mxu0  ;;  %v526_v13 = vadd.f32 %v525_v40, %v3503_v48  ;;  %v1950_v48 = vld [vmem:[%s3098_s19 + $0xc] sm:$0xe]  ;;  %v1732_v16 = vsel %vm242_vm3, %v1727_v61, %v1731_v62 }
 0x107   : > { %v3575_v38 = vadd.f32 %v678_v35, %v518_v25  ;;  %v2614_v52 = vpop.f32.mrf.mxu1  ;;  %v2464_v6 = vcombine.low %v1950_v48, %v1653_v22  ;;  %v1745_v35 = vshll.u32 %v3611_v28, 16 }
 0x108   : > { %v2648_v43 = vpop.f32.mrf.mxu0  ;;  %v3631_v52 = vld [vmem:[%s3098_s19 + $0x2c] sm:$0xff]  }
 0x109   : > { %v530_v57 = vpop.f32.mrf.mxu1  ;;  %2792 = vmatmul.mubr.msk.bf16.gmra.mxu1 %vm319_vm4, %v1280_v45  ;;  %v1956_v22 = vrot.slane %v2464_v6, 1  ;;  %v1959_v45 = vrot.slane %v3591_v63, 1  ;;  %v1747_v15 = vrot.slane %v1745_v35, 1 }
 0x10a   : > { %v683_v55 = vpop.f32.mrf.mxu0  ;;  %2826 = vmatmul.mubr.msk.bf16.gmra.mxu0 %vm319_vm4, %v2954_v36  ;;  %v531_v60 = vadd.f32 %v530_v57, %v3508_v54  ;;  %2835 = vmatprep.mubr.msk.bf16.mxu1 %vm3049_vm2, %v3047_v1  ;;  %v1733_v54 = vshrl.u32 %v3572_v34, 16 }
 0x10b   : > { %v3581_v56 = vadd.f32 %v683_v55, %v523_v30  ;;  %2829 = vmatprep.mubr.msk.bf16.mxu0 %vm3049_vm2, %v3047_v1  ;;  %v2617_v46 = vpop.f32.mrf.mxu1  ;;  %v1958_v32 = vsel %vm591_vm5, %v1956_v22, %v1957_v23  ;;  %v1960_v48 = vsel %vm591_vm5, %v1957_v23, %v1959_v45 }
 0x10c   : > { %v2651_v59 = vpop.f32.mrf.mxu0  ;;  %v1735_v26 = vor.u32 %v1733_v54, %v1731_v62  ;;  %v1753_v46 = vshll.u32 %v3631_v52, 16  ;;  %v3650_v54 = vld [vmem:[%s3098_s19 + $0x34] sm:$0xff]  }
 0x10d   : > { %v533_v10 = vpop.f32.mrf.mxu1 }
 0x10e   : > { %v686_v0 = vpop.f32.mrf.mxu0  ;;  %v534_v12 = vadd.f32 %v533_v10, %v3520_v58  ;;  %v1740_v33 = vsel %vm242_vm3, %v1735_v26, %v1739_v27  ;;  %v1961_v10 = vrot.slane %v3611_v28, 1  ;;  %v1757_v26 = vshrl.u32 %v3631_v52, 16 }
 0x10f   : > { %v3594_v5 = vadd.f32 %v686_v0, %v526_v13  ;;  %v2618_v7 = vpop.f32.mrf.mxu1 }
 0x110   : > { %v2652_v18 = vpop.f32.mrf.mxu0  ;;  %v1962_v22 = vsel %vm591_vm5, %v1959_v45, %v1961_v10 }
 0x111   : > { %v538_v58 = vpop.f32.mrf.mxu1  ;;  %2836 = vmatmul.mubr.msk.bf16.vlgmr.msra.gmra.mxu1 %vm319_vm4, %v1732_v16  ;;  %v1755_v16 = vrot.slane %v1753_v46, 1 }
 0x112   : > { %v691_v21 = vpop.f32.mrf.mxu0  ;;  %2830 = vmatmul.mubr.msk.bf16.gmra.mxu0 %vm319_vm4, %v2955_v41  ;;  %v539_v25 = vadd.f32 %v538_v58, %v3528_v14  ;;  %2839 = vmatprep.mubr.msk.bf16.mxu1 %vm3049_vm2, %v3047_v1  ;;  %v1741_v14 = vshrl.u32 %v3591_v63, 16  ;;  %v1749_v63 = vshrl.u32 %v3611_v28, 16 }
 0x113   : > { %v3601_v8 = vadd.f32 %v691_v21, %v531_v60  ;;  %2873 = vmatprep.mubr.msk.bf16.mxu0 %vm3049_vm2, %v3047_v1  ;;  %v2621_v9 = vpop.f32.mrf.mxu1 }
 0x114   : > { %v2655_v24 = vpop.f32.mrf.mxu0  ;;  %v1743_v42 = vor.u32 %v1741_v14, %v1739_v27  ;;  %v1761_v27 = vshll.u32 %v3650_v54, 16  ;;  %v3670_v14 = vld [vmem:[%s3098_s19 + $0x3c] sm:$0xff]  }
 0x115   : > { %v541_v30 = vpop.f32.mrf.mxu1 }
 0x116   : > { %v694_v29 = vpop.f32.mrf.mxu0  ;;  %v542_v17 = vadd.f32 %v541_v30, %v3539_v47 }
 0x117   : > { %v3613_v31 = vadd.f32 %v694_v29, %v534_v12  ;;  %v2622_v36 = vpop.f32.mrf.mxu1  ;;  %v1751_v12 = vor.u32 %v1749_v63, %v1747_v15  ;;  %v3690_v63 = vld [vmem:[%s3098_s19 + $0x44] sm:$0xff]  }
 0x118   : > { %v2656_v34 = vpop.f32.mrf.mxu0 }
 0x119   : > { %v546_v13 = vpop.f32.mrf.mxu1  ;;  %2840 = vmatmul.mubr.msk.bf16.gmra.mxu1 %vm319_vm4, %v1740_v33  ;;  %v1763_v33 = vrot.slane %v1761_v27, 1  ;;  %v3710_v27 = vld [vmem:[%s3098_s19 + $0x4c] sm:$0xff]  }
 0x11a   : > { %v699_v40 = vpop.f32.mrf.mxu0  ;;  %2874 = vmatmul.mubr.msk.bf16.vlgmr.msra.gmra.mxu0 %vm319_vm4, %v1958_v32  ;;  %v547_v50 = vadd.f32 %v546_v13, %v3545_v11  ;;  %2843 = vmatprep.mubr.msk.bf16.mxu1 %vm3049_vm2, %v3047_v1  ;;  %v1748_v11 = vsel %vm242_vm3, %v1743_v42, %v1747_v15  ;;  %v1963_v32 = vrot.slane %v3631_v52, 1  ;;  %v1769_v15 = vshll.u32 %v3670_v14, 16 }
 0x11b   : > { %v3621_v43 = vadd.f32 %v699_v40, %v539_v25  ;;  %2877 = vmatprep.mubr.msk.bf16.mxu0 %vm3049_vm2, %v3047_v1  ;;  %v2625_v55 = vpop.f32.mrf.mxu1  ;;  %v1756_v25 = vsel %vm242_vm3, %v1751_v12, %v1755_v16 }
 0x11c   : > { %v2659_v47 = vpop.f32.mrf.mxu0  ;;  %v1964_v45 = vsel %vm591_vm5, %v1961_v10, %v1963_v32 }
 0x11d   : > { %v549_v60 = vpop.f32.mrf.mxu1 }
 0x11e   : > { %v702_v57 = vpop.f32.mrf.mxu0  ;;  %v550_v62 = vadd.f32 %v549_v60, %v3554_v20 }
 0x11f   : > { %v3633_v59 = vadd.f32 %v702_v57, %v542_v17  ;;  %v2626_v0 = vpop.f32.mrf.mxu1  ;;  %v1759_v17 = vor.u32 %v1757_v26, %v1755_v16 }
 0x120   : > { %v2660_v61 = vpop.f32.mrf.mxu0 }
 0x121   : > { %v554_v18 = vpop.f32.mrf.mxu1  ;;  %2844 = vmatmul.mubr.msk.bf16.gmra.mxu1 %vm319_vm4, %v1748_v11  ;;  %v1764_v42 = vsel %vm242_vm3, %v1759_v17, %v1763_v33  ;;  %v1771_v11 = vrot.slane %v1769_v15, 1 }
 0x122   : > { %v707_v41 = vpop.f32.mrf.mxu0  ;;  %2878 = vmatmul.mubr.msk.bf16.gmra.mxu0 %vm319_vm4, %v1960_v48  ;;  %2847 = vmatprep.mubr.msk.bf16.mxu1 %vm3049_vm2, %v3047_v1  ;;  %v555_v24 = vadd.f32 %v554_v18, %v3481_v4  ;;  %v1965_v48 = vrot.slane %v3650_v54, 1 }
 0x123   : > { %v3641_v6 = vadd.f32 %v707_v41, %v547_v50  ;;  %2881 = vmatprep.mubr.msk.bf16.mxu0 %vm3049_vm2, %v3047_v1  ;;  %v2629_v19 = vpop.f32.mrf.mxu1 }
 0x124   : > { %v2663_v20 = vpop.f32.mrf.mxu0  ;;  %v1966_v10 = vsel %vm591_vm5, %v1963_v32, %v1965_v48 }
 0x125   : > { %v557_v23 = vpop.f32.mrf.mxu1 }
 0x126   : > { %v710_v7 = vpop.f32.mrf.mxu0  ;;  %v558_v34 = vadd.f32 %v557_v23, %v3490_v37  ;;  %v1765_v37 = vshrl.u32 %v3650_v54, 16  ;;  %v1777_v54 = vshll.u32 %v3690_v63, 16  ;;  %v1967_v23 = vrot.slane %v3670_v14, 1 }
 0x127   : > { %v3652_v21 = vadd.f32 %v710_v7, %v550_v62  ;;  %v2630_v28 = vpop.f32.mrf.mxu1 }
 0x128   : > { %v2664_v58 = vpop.f32.mrf.mxu0  ;;  %v1767_v62 = vor.u32 %v1765_v37, %v1763_v33  ;;  %v1779_v26 = vrot.slane %v1777_v54, 1 }
 0x129   : > { %v562_v30 = vpop.f32.mrf.mxu1  ;;  %2848 = vmatmul.mubr.msk.bf16.gmra.mxu1 %vm319_vm4, %v1756_v25 }
 0x12a   : > { %v715_v9 = vpop.f32.mrf.mxu0  ;;  %2882 = vmatmul.mubr.msk.bf16.gmra.mxu0 %vm319_vm4, %v1962_v22  ;;  %2851 = vmatprep.mubr.msk.bf16.mxu1 %vm3049_vm2, %v3047_v1  ;;  %v563_v50 = vadd.f32 %v562_v30, %v3497_v39  ;;  %v1772_v16 = vsel %vm242_vm3, %v1767_v62, %v1771_v11  ;;  %v1968_v30 = vsel %vm591_vm5, %v1965_v48, %v1967_v23 }
 0x12b   : > { %v3660_v29 = vadd.f32 %v715_v9, %v555_v24  ;;  %2885 = vmatprep.mubr.msk.bf16.mxu0 %vm3049_vm2, %v3047_v1  ;;  %v2633_v35 = vpop.f32.mrf.mxu1 }
 0x12c   : > { %v2667_v4 = vpop.f32.mrf.mxu0 }
 0x12d   : > { %v565_v13 = vpop.f32.mrf.mxu1 }
 0x12e   : > { %v718_v36 = vpop.f32.mrf.mxu0  ;;  %v566_v61 = vadd.f32 %v565_v13, %v3506_v51  ;;  %v1773_v51 = vshrl.u32 %v3670_v14, 16  ;;  %v1785_v14 = vshll.u32 %v3710_v27, 16  ;;  %v1969_v13 = vrot.slane %v3690_v63, 1 }
 0x12f   : > { %v3672_v40 = vadd.f32 %v718_v36, %v558_v34  ;;  %v2634_v52 = vpop.f32.mrf.mxu1 }
 0x130   : > { %v2668_v47 = vpop.f32.mrf.mxu0  ;;  %v1775_v25 = vor.u32 %v1773_v51, %v1771_v11  ;;  %v1787_v15 = vrot.slane %v1785_v14, 1  ;;  %v2966_v52 = vld [vmem:[%s3098_s19 + $0x54] ss:$0 sps:$4 sm:$0x11]  }
 0x131   : > { %v570_v60 = vpop.f32.mrf.mxu1  ;;  %2852 = vmatmul.mubr.msk.bf16.gmra.mxu1 %vm319_vm4, %v1764_v42 }
 0x132   : > { %v723_v55 = vpop.f32.mrf.mxu0  ;;  %2886 = vmatmul.mubr.msk.bf16.gmra.mxu0 %vm319_vm4, %v1964_v45  ;;  %2855 = vmatprep.mubr.msk.bf16.mxu1 %vm3049_vm2, %v3047_v1  ;;  %v571_v12 = vadd.f32 %v570_v60, %v3513_v44  ;;  %v1780_v33 = vsel %vm242_vm3, %v1775_v25, %v1779_v26 }
 0x133   : > { %v3680_v57 = vadd.f32 %v723_v55, %v563_v50  ;;  %2889 = vmatprep.mubr.msk.bf16.mxu0 %vm3049_vm2, %v3047_v1  ;;  %v2637_v46 = vpop.f32.mrf.mxu1 }
 0x134   : > { %v2671_v39 = vpop.f32.mrf.mxu0 }
 0x135   : > { %v573_v18 = vpop.f32.mrf.mxu1  ;;  %v1970_v39 = vsel %vm591_vm5, %v1967_v23, %v1969_v13 }
 0x136   : > { %v726_v0 = vpop.f32.mrf.mxu0  ;;  %v574_v24 = vadd.f32 %v573_v18, %v3523_v53  ;;  %v1781_v53 = vshrl.u32 %v3690_v63, 16  ;;  %v1793_v63 = vshll.u32 %v2966_v52, 16  ;;  %v1971_v18 = vrot.slane %v3710_v27, 1 }
 0x137   : > { %v3692_v41 = vadd.f32 %v726_v0, %v566_v61  ;;  %v2638_v19 = vpop.f32.mrf.mxu1 }
 0x138   : > { %v2672_v20 = vpop.f32.mrf.mxu0  ;;  %v1783_v37 = vor.u32 %v1781_v53, %v1779_v26  ;;  %v1795_v51 = vrot.slane %v1793_v63, 1  ;;  %v1972_v23 = vsel %vm591_vm5, %v1969_v13, %v1971_v18 }
 0x139   : > { %v578_v58 = vpop.f32.mrf.mxu1  ;;  %2856 = vmatmul.mubr.msk.bf16.gmra.mxu1 %vm319_vm4, %v1772_v16 }
 0x13a   : > { %v731_v7 = vpop.f32.mrf.mxu0  ;;  %2890 = vmatmul.mubr.msk.bf16.gmra.mxu0 %vm319_vm4, %v1966_v10  ;;  %2859 = vmatprep.mubr.msk.bf16.mxu1 %vm3049_vm2, %v3047_v1  ;;  %v579_v17 = vadd.f32 %v578_v58, %v3533_v49 }
 0x13b   : > { %v3700_v22 = vadd.f32 %v731_v7, %v571_v12  ;;  %2893 = vmatprep.mubr.msk.bf16.mxu0 %vm3049_vm2, %v3047_v1  ;;  %v2641_v28 = vpop.f32.mrf.mxu1 }
 0x13c   : > { %v2675_v44 = vpop.f32.mrf.mxu0  ;;  %v1973_v28 = vrot.slane %v2966_v52, 1 }
 0x13d   : > { %v581_v4 = vpop.f32.mrf.mxu1 }
 0x13e   : > { %v734_v9 = vpop.f32.mrf.mxu0  ;;  %v582_v50 = vadd.f32 %v581_v4, %v3542_v3  ;;  %v1788_v3 = vsel %vm242_vm3, %v1783_v37, %v1787_v15 }
 0x13f   : > { %v3712_v32 = vadd.f32 %v734_v9, %v574_v24  ;;  %v2642_v35 = vpop.f32.mrf.mxu1 }
 0x140   : > { %v2676_v34 = vpop.f32.mrf.mxu0 }
 0x141   : > { %v917_v47 = vpop.f32.mrf.mxu1  ;;  %2860 = vmatmul.mubr.msk.bf16.gmra.mxu1 %vm319_vm4, %v1780_v33  ;;  %v1974_v33 = vsel %vm591_vm5, %v1971_v18, %v1973_v28 }
 0x142   : > { %v739_v36 = vpop.f32.mrf.mxu0  ;;  %2894 = vmatmul.mubr.msk.bf16.gmra.mxu0 %vm319_vm4, %v1968_v30  ;;  %v988_v42 = vadd.f32 %v917_v47, %v3562_v2  ;;  %2863 = vmatprep.mubr.msk.bf16.mxu1 %vm3049_vm2, %v3047_v1  ;;  %v1789_v2 = vshrl.u32 %v3710_v27, 16 }
 0x143   : > { %v3720_v45 = vadd.f32 %v739_v36, %v579_v17  ;;  %2897 = vmatprep.mubr.msk.bf16.mxu0 %vm3049_vm2, %v3047_v1  ;;  %v2685_v55 = vpop.f32.mrf.mxu1 }
 0x144   : > { %v2679_v49 = vpop.f32.mrf.mxu0  ;;  %v1791_v16 = vor.u32 %v1789_v2, %v1787_v15 }
 0x145   : > { %v920_v61 = vpop.f32.mrf.mxu1 }
 0x146   : > { %v742_v48 = vpop.f32.mrf.mxu0  ;;  %v989_v11 = vadd.f32 %v920_v61, %v3575_v38  ;;  %v1796_v25 = vsel %vm242_vm3, %v1791_v16, %v1795_v51 }
 0x147   : > { %v3731_v60 = vadd.f32 %v742_v48, %v582_v50  ;;  %v2686_v46 = vpop.f32.mrf.mxu1 }
 0x148   : > { %v2680_v62 = vpop.f32.mrf.mxu0 }
 0x149   : > { %v925_v20 = vpop.f32.mrf.mxu1  ;;  %2864 = vmatmul.mubr.msk.bf16.gmra.mxu1 %vm319_vm4, %v1788_v3 }
 0x14a   : > { %v1166_v0 = vpop.f32.mrf.mxu0  ;;  %2898 = vmatmul.mubr.msk.bf16.gmra.mxu0 %vm319_vm4, %v1970_v39  ;;  %v990_v12 = vadd.f32 %v925_v20, %v3581_v56  ;;  %2867 = vmatprep.mubr.msk.bf16.mxu1 %vm3049_vm2, %v3047_v1 }
 0x14b   : > { %v3738_v10 = vadd.f32 %v1166_v0, %v988_v42  ;;  %2901 = vmatprep.mubr.msk.bf16.mxu0 %vm3049_vm2, %v3047_v1  ;;  %v2689_v54 = vpop.f32.mrf.mxu1 }
 0x14c   : > { %v2723_v38 = vpop.f32.mrf.mxu0 }
 0x14d   : > { %v928_v58 = vpop.f32.mrf.mxu1 }
 0x14e   : > { %v1169_v19 = vpop.f32.mrf.mxu0  ;;  %v991_v24 = vadd.f32 %v928_v58, %v3594_v5 }
 0x14f   : > { %v3747_v7 = vadd.f32 %v1169_v19, %v989_v11  ;;  %v2690_v26 = vpop.f32.mrf.mxu1 }
 0x150   : > { %v2724_v44 = vpop.f32.mrf.mxu0 }
 0x151   : > { %v933_v9 = vpop.f32.mrf.mxu1  ;;  %2868 = vmatmul.mubr.msk.bf16.gmra.mxu1 %vm319_vm4, %v1796_v25 }
 0x152   : > { %v1174_v27 = vpop.f32.mrf.mxu0  ;;  %2902 = vmatmul.mubr.msk.bf16.gmra.mxu0 %vm319_vm4, %v1972_v23  ;;  %v992_v4 = vadd.f32 %v933_v9, %v3601_v8 }
 0x153   : > { %v3753_v56 = vadd.f32 %v1174_v27, %v990_v12  ;;  %2905 = vmatprep.mubr.msk.bf16.mxu0 %vm3049_vm2, %v3047_v1  ;;  %v2693_v34 = vpop.f32.mrf.mxu1 }
 0x154   : > { %v2727_v30 = vpop.f32.mrf.mxu0 }
 0x155   : > { %v936_v53 = vpop.f32.mrf.mxu1 }
 0x156   : > { %v1177_v5 = vpop.f32.mrf.mxu0  ;;  %v993_v35 = vadd.f32 %v936_v53, %v3613_v31 }
 0x157   : > { %v3759_v17 = vadd.f32 %v1177_v5, %v991_v24  ;;  %v2694_v36 = vpop.f32.mrf.mxu1 }
 0x158   : > { %v2728_v14 = vpop.f32.mrf.mxu0 }
 0x159   : > { %v941_v47 = vpop.f32.mrf.mxu1 }
 0x15a   : > { %v1182_v13 = vpop.f32.mrf.mxu0  ;;  %2906 = vmatmul.mubr.msk.bf16.gmra.mxu0 %vm319_vm4, %v1974_v33  ;;  %v994_v8 = vadd.f32 %v941_v47, %v3621_v43 }
 0x15b   : > { %v3764_v1 = vadd.f32 %v1182_v13, %v992_v4  ;;  %v2697_v50 = vpop.f32.mrf.mxu1 }
 0x15c   : > { %v2731_v49 = vpop.f32.mrf.mxu0 }
 0x15d   : > { %v944_v15 = vpop.f32.mrf.mxu1 }
 0x15e   : > { %v1185_v42 = vpop.f32.mrf.mxu0  ;;  %v995_v55 = vadd.f32 %v944_v15, %v3633_v59 }
 0x15f   : > { %v3767_v37 = vadd.f32 %v1185_v42, %v993_v35  ;;  %v2698_v48 = vpop.f32.mrf.mxu1 }
 0x160   : > { %v2732_v52 = vpop.f32.mrf.mxu0 }
 0x161   : > { %v949_v61 = vpop.f32.mrf.mxu1 }
 0x162   : > { %v1190_v31 = vpop.f32.mrf.mxu0  ;;  %v996_v11 = vadd.f32 %v949_v61, %v3641_v6 }
 0x163   : > { %v3770_v39 = vadd.f32 %v1190_v31, %v994_v8  ;;  %v2701_v3 = vpop.f32.mrf.mxu1 }
 0x164   : > { %v2735_v62 = vpop.f32.mrf.mxu0 }
 0x165   : > { %v952_v43 = vpop.f32.mrf.mxu1 }
 0x166   : > { %v1193_v2 = vpop.f32.mrf.mxu0  ;;  %v997_v0 = vadd.f32 %v952_v43, %v3652_v21 }
 0x167   : > { %v3773_v63 = vadd.f32 %v1193_v2, %v995_v55  ;;  %v2702_v18 = vpop.f32.mrf.mxu1 }
 0x168   : > { %v2736_v46 = vpop.f32.mrf.mxu0 }
 0x169   : > { %v957_v59 = vpop.f32.mrf.mxu1 }
 0x16a   : > { %v1198_v20 = vpop.f32.mrf.mxu0  ;;  %v998_v16 = vadd.f32 %v957_v59, %v3660_v29 }
 0x16b   : > { %v3776_v38 = vadd.f32 %v1198_v20, %v996_v11  ;;  %v2705_v51 = vpop.f32.mrf.mxu1 }
 0x16c   : > { %v2739_v12 = vpop.f32.mrf.mxu0 }
 0x16d   : > { %v960_v6 = vpop.f32.mrf.mxu1 }
 0x16e   : > { %v1201_v54 = vpop.f32.mrf.mxu0  ;;  %v999_v58 = vadd.f32 %v960_v6, %v3672_v40 }
 0x16f   : > { %v3779_v19 = vadd.f32 %v1201_v54, %v997_v0  ;;  %v2706_v44 = vpop.f32.mrf.mxu1 }
 0x170   : > { %v2740_v23 = vpop.f32.mrf.mxu0 }
 0x171   : > { %v965_v21 = vpop.f32.mrf.mxu1 }
 0x172   : > { %v1206_v24 = vpop.f32.mrf.mxu0  ;;  %v1000_v27 = vadd.f32 %v965_v21, %v3680_v57 }
 0x173   : > { %v3782_v25 = vadd.f32 %v1206_v24, %v998_v16  ;;  %v2709_v28 = vpop.f32.mrf.mxu1 }
 0x174   : > { %v2743_v26 = vpop.f32.mrf.mxu0 }
 0x175   : > { %v968_v29 = vpop.f32.mrf.mxu1 }
 0x176   : > { %v1209_v9 = vpop.f32.mrf.mxu0  ;;  %v1001_v34 = vadd.f32 %v968_v29, %v3692_v41 }
 0x177   : > { %v3785_v30 = vadd.f32 %v1209_v9, %v999_v58  ;;  %v2710_v5 = vpop.f32.mrf.mxu1 }
 0x178   : > { %v2744_v4 = vpop.f32.mrf.mxu0 }
 0x179   : > { %v973_v40 = vpop.f32.mrf.mxu1 }
 0x17a   : > { %v1214_v33 = vpop.f32.mrf.mxu0  ;;  %v1002_v35 = vadd.f32 %v973_v40, %v3700_v22 }
 0x17b   : > { %v3788_v53 = vadd.f32 %v1214_v33, %v1000_v27  ;;  %v2713_v36 = vpop.f32.mrf.mxu1 }
 0x17c   : > { %v2747_v14 = vpop.f32.mrf.mxu0 }
 0x17d   : > { %v976_v57 = vpop.f32.mrf.mxu1 }
 0x17e   : > { %v1217_v13 = vpop.f32.mrf.mxu0  ;;  %v1003_v8 = vadd.f32 %v976_v57, %v3712_v32 }
 0x17f   : > { %v3791_v47 = vadd.f32 %v1217_v13, %v1001_v34  ;;  %v2714_v50 = vpop.f32.mrf.mxu1 }
 0x180   : > { %v2748_v49 = vpop.f32.mrf.mxu0 }
 0x181   : > { %v981_v41 = vpop.f32.mrf.mxu1 }
 0x182   : > { %v1222_v42 = vpop.f32.mrf.mxu0  ;;  %v1004_v55 = vadd.f32 %v981_v41, %v3720_v45 }
 0x183   : > { %v3794_v15 = vadd.f32 %v1222_v42, %v1002_v35  ;;  %v2717_v48 = vpop.f32.mrf.mxu1 }
 0x184   : > { %v2751_v52 = vpop.f32.mrf.mxu0 }
 0x185   : > { %v984_v22 = vpop.f32.mrf.mxu1 }
 0x186   : > { %v1225_v31 = vpop.f32.mrf.mxu0  ;;  %v1005_v11 = vadd.f32 %v984_v22, %v3731_v60 }
 0x187   : > { %v3797_v61 = vadd.f32 %v1225_v31, %v1003_v8  ;;  %v2718_v3 = vpop.f32.mrf.mxu1 }
 0x188   : > { %v2752_v62 = vpop.f32.mrf.mxu0 }
 0x189   : > { %v1345_v32 = vpop.f32.mrf.mxu1 }
 0x18a   : > { %v1230_v2 = vpop.f32.mrf.mxu0  ;;  %v1416_v0 = vadd.f32 %v1345_v32, %v3738_v10 }
 0x18b   : > { %v3800_v43 = vadd.f32 %v1230_v2, %v1004_v55  ;;  %v2761_v18 = vpop.f32.mrf.mxu1 }
 0x18c   : > { %v2755_v46 = vpop.f32.mrf.mxu0 }
 0x18d   : > { %v1348_v45 = vpop.f32.mrf.mxu1 }
 0x18e   : > { %v1233_v20 = vpop.f32.mrf.mxu0  ;;  %v1417_v16 = vadd.f32 %v1348_v45, %v3747_v7 }
 0x18f   : > { %v3803_v59 = vadd.f32 %v1233_v20, %v1005_v11  ;;  %v2762_v51 = vpop.f32.mrf.mxu1 }
 0x190   : > { %v2756_v12 = vpop.f32.mrf.mxu0 }
 0x191   : > { %v1353_v60 = vpop.f32.mrf.mxu1 }
 0x192   : > { %v1563_v54 = vpop.f32.mrf.mxu0  ;;  %v1418_v58 = vadd.f32 %v1353_v60, %v3753_v56 }
 0x193   : > { %v3806_v6 = vadd.f32 %v1563_v54, %v1416_v0  ;;  %v2765_v44 = vpop.f32.mrf.mxu1 }
 0x194   : > { %v2799_v23 = vpop.f32.mrf.mxu0 }
 0x195   : > { %v1356_v10 = vpop.f32.mrf.mxu1 }
 0x196   : > { %v1566_v24 = vpop.f32.mrf.mxu0  ;;  %v1419_v27 = vadd.f32 %v1356_v10, %v3759_v17 }
 0x197   : > { %v3809_v21 = vadd.f32 %v1566_v24, %v1417_v16  ;;  %v2766_v28 = vpop.f32.mrf.mxu1 }
 0x198   : > { %v2800_v26 = vpop.f32.mrf.mxu0 }
 0x199   : > { %v1361_v7 = vpop.f32.mrf.mxu1 }
 0x19a   : > { %v1571_v9 = vpop.f32.mrf.mxu0  ;;  %v1420_v34 = vadd.f32 %v1361_v7, %v3764_v1 }
 0x19b   : > { %v3812_v29 = vadd.f32 %v1571_v9, %v1418_v58  ;;  %v2769_v5 = vpop.f32.mrf.mxu1 }
 0x19c   : > { %v2803_v4 = vpop.f32.mrf.mxu0 }
 0x19d   : > { %v1364_v56 = vpop.f32.mrf.mxu1 }
 0x19e   : > { %v1574_v33 = vpop.f32.mrf.mxu0  ;;  %v1421_v35 = vadd.f32 %v1364_v56, %v3767_v37 }
 0x19f   : > { %v3815_v40 = vadd.f32 %v1574_v33, %v1419_v27  ;;  %v2770_v36 = vpop.f32.mrf.mxu1 }
 0x1a0   : > { %v2804_v14 = vpop.f32.mrf.mxu0 }
 0x1a1   : > { %v1369_v17 = vpop.f32.mrf.mxu1 }
 0x1a2   : > { %v1579_v13 = vpop.f32.mrf.mxu0  ;;  %v1422_v8 = vadd.f32 %v1369_v17, %v3770_v39 }
 0x1a3   : > { %v3818_v57 = vadd.f32 %v1579_v13, %v1420_v34  ;;  %v2773_v50 = vpop.f32.mrf.mxu1 }
 0x1a4   : > { %v2807_v49 = vpop.f32.mrf.mxu0 }
 0x1a5   : > { %v1372_v1 = vpop.f32.mrf.mxu1 }
 0x1a6   : > { %v1582_v42 = vpop.f32.mrf.mxu0  ;;  %v1423_v55 = vadd.f32 %v1372_v1, %v3773_v63 }
 0x1a7   : > { %v3821_v41 = vadd.f32 %v1582_v42, %v1421_v35  ;;  %v2774_v48 = vpop.f32.mrf.mxu1 }
 0x1a8   : > { %v2808_v52 = vpop.f32.mrf.mxu0 }
 0x1a9   : > { %v1377_v37 = vpop.f32.mrf.mxu1 }
 0x1aa   : > { %v1587_v31 = vpop.f32.mrf.mxu0  ;;  %v1424_v11 = vadd.f32 %v1377_v37, %v3776_v38 }
 0x1ab   : > { %v3824_v22 = vadd.f32 %v1587_v31, %v1422_v8  ;;  %v2777_v3 = vpop.f32.mrf.mxu1 }
 0x1ac   : > { %v2811_v62 = vpop.f32.mrf.mxu0 }
 0x1ad   : > { %v1380_v39 = vpop.f32.mrf.mxu1 }
 0x1ae   : > { %v1590_v2 = vpop.f32.mrf.mxu0  ;;  %v1425_v0 = vadd.f32 %v1380_v39, %v3779_v19 }
 0x1af   : > { %v3827_v32 = vadd.f32 %v1590_v2, %v1423_v55  ;;  %v2778_v18 = vpop.f32.mrf.mxu1 }
 0x1b0   : > { %v2812_v46 = vpop.f32.mrf.mxu0 }
 0x1b1   : > { %v1385_v63 = vpop.f32.mrf.mxu1 }
 0x1b2   : > { %v1595_v20 = vpop.f32.mrf.mxu0  ;;  %v1426_v16 = vadd.f32 %v1385_v63, %v3782_v25 }
 0x1b3   : > { %v3830_v45 = vadd.f32 %v1595_v20, %v1424_v11  ;;  %v2781_v51 = vpop.f32.mrf.mxu1 }
 0x1b4   : > { %v2815_v12 = vpop.f32.mrf.mxu0 }
 0x1b5   : > { %v1388_v38 = vpop.f32.mrf.mxu1 }
 0x1b6   : > { %v1598_v54 = vpop.f32.mrf.mxu0  ;;  %v1427_v58 = vadd.f32 %v1388_v38, %v3785_v30 }
 0x1b7   : > { %v3833_v60 = vadd.f32 %v1598_v54, %v1425_v0  ;;  %v2782_v44 = vpop.f32.mrf.mxu1 }
 0x1b8   : > { %v2816_v23 = vpop.f32.mrf.mxu0 }
 0x1b9   : > { %v1393_v19 = vpop.f32.mrf.mxu1 }
 0x1ba   : > { %v1603_v24 = vpop.f32.mrf.mxu0  ;;  %v1428_v27 = vadd.f32 %v1393_v19, %v3788_v53 }
 0x1bb   : > { %v3836_v10 = vadd.f32 %v1603_v24, %v1426_v16  ;;  %v2785_v28 = vpop.f32.mrf.mxu1 }
 0x1bc   : > { %v2819_v26 = vpop.f32.mrf.mxu0 }
 0x1bd   : > { %v1396_v25 = vpop.f32.mrf.mxu1 }
 0x1be   : > { %v1606_v9 = vpop.f32.mrf.mxu0  ;;  %v1429_v34 = vadd.f32 %v1396_v25, %v3791_v47 }
 0x1bf   : > { %v3839_v7 = vadd.f32 %v1606_v9, %v1427_v58  ;;  %v2786_v5 = vpop.f32.mrf.mxu1 }
 0x1c0   : > { %v2820_v4 = vpop.f32.mrf.mxu0 }
 0x1c1   : > { %v1401_v30 = vpop.f32.mrf.mxu1 }
 0x1c2   : > { %v1611_v33 = vpop.f32.mrf.mxu0  ;;  %v1430_v35 = vadd.f32 %v1401_v30, %v3794_v15 }
 0x1c3   : > { %v3842_v56 = vadd.f32 %v1611_v33, %v1428_v27  ;;  %v2789_v36 = vpop.f32.mrf.mxu1 }
 0x1c4   : > { %v2823_v14 = vpop.f32.mrf.mxu0 }
 0x1c5   : > { %v1404_v53 = vpop.f32.mrf.mxu1 }
 0x1c6   : > { %v1614_v13 = vpop.f32.mrf.mxu0  ;;  %v1431_v8 = vadd.f32 %v1404_v53, %v3797_v61 }
 0x1c7   : > { %v3845_v17 = vadd.f32 %v1614_v13, %v1429_v34  ;;  %v2790_v50 = vpop.f32.mrf.mxu1 }
 0x1c8   : > { %v2824_v49 = vpop.f32.mrf.mxu0 }
 0x1c9   : > { %v1409_v47 = vpop.f32.mrf.mxu1 }
 0x1ca   : > { %v1619_v42 = vpop.f32.mrf.mxu0  ;;  %v1432_v55 = vadd.f32 %v1409_v47, %v3800_v43 }
 0x1cb   : > { %v3848_v1 = vadd.f32 %v1619_v42, %v1430_v35  ;;  %v2793_v48 = vpop.f32.mrf.mxu1 }
 0x1cc   : > { %v2827_v52 = vpop.f32.mrf.mxu0 }
 0x1cd   : > { %v1412_v15 = vpop.f32.mrf.mxu1 }
 0x1ce   : > { %v1622_v31 = vpop.f32.mrf.mxu0  ;;  %v1433_v11 = vadd.f32 %v1412_v15, %v3803_v59  ;;  %v3862_v59 = vld [vmem:[%s4010_s2] ss:$0 sm:$0xff] }
 0x1cf   : > { %v3851_v37 = vadd.f32 %v1622_v31, %v1431_v8  ;;  %v2794_v3 = vpop.f32.mrf.mxu1 }
 0x1d0   : > { %v2828_v62 = vpop.f32.mrf.mxu0 }
 0x1d1   : > { %v1861_v61 = vpop.f32.mrf.mxu1 }
 0x1d2   : > { %v1627_v2 = vpop.f32.mrf.mxu0  ;;  %v1932_v12 = vadd.f32 %v1861_v61, %v3806_v6 }
 0x1d3   : > { %v3854_v39 = vadd.f32 %v1627_v2, %v1432_v55  ;;  %v2837_v0 = vpop.f32.mrf.mxu1 }
 0x1d4   : > { %v2831_v46 = vpop.f32.mrf.mxu0 }
 0x1d5   : > { %v1864_v63 = vpop.f32.mrf.mxu1 }
 0x1d6   : > { %v1630_v18 = vpop.f32.mrf.mxu0  ;;  %v1933_v58 = vadd.f32 %v1864_v63, %v3809_v21 }
 0x1d7   : > { %v3856_v20 = vadd.f32 %v1630_v18, %v1433_v11  ;;  %v2838_v16 = vpop.f32.mrf.mxu1 }
 0x1d8   : > { %v2832_v43 = vpop.f32.mrf.mxu0 }
 0x1d9   : > { %v1869_v38 = vpop.f32.mrf.mxu1 }
 0x1da   : > { %v2039_v51 = vpop.f32.mrf.mxu0  ;;  %v1934_v9 = vadd.f32 %v1869_v38, %v3812_v29 }
 0x1db   : > { %v2110_v54 = vadd.f32 %v2039_v51, %v1932_v12  ;;  %v2841_v24 = vpop.f32.mrf.mxu1 }
 0x1dc   : > { %v2875_v23 = vpop.f32.mrf.mxu0 }
 0x1dd   : > { %v3866_v44 = vadd.f32 %v3862_v59, %v2110_v54  ;;  %v1872_v27 = vpop.f32.mrf.mxu1 }
 0x1de   : > { %v2042_v19 = vpop.f32.mrf.mxu0  ;;  %v1935_v35 = vadd.f32 %v1872_v27, %v3815_v40 }
 0x1df   : > { %v2153_v26 = vsub.f32 0.0, %v3866_v44  ;;  %v2111_v6 = vadd.f32 %v2042_v19, %v1933_v58  ;;  %v2842_v34 = vpop.f32.mrf.mxu1 }
 0x1e0   : > { %v2876_v28 = vpop.f32.mrf.mxu0 }
 0x1e1   : > { %v2171_v25 = vmul.f32 1.442695, %v2153_v26  ;;  %v3871_v4 = vadd.f32 %v3862_v59, %v2111_v6  ;;  %v1877_v30 = vpop.f32.mrf.mxu1 }
 0x1e2   : > { %v2047_v5 = vpop.f32.mrf.mxu0  ;;  %v1936_v47 = vadd.f32 %v1877_v30, %v3818_v57 }
 0x1e3   : > { %2967 = vpow2.f32 %v2171_v25  ;;  %v2154_v21 = vsub.f32 0.0, %v3871_v4  ;;  %v2112_v33 = vadd.f32 %v2047_v5, %v1934_v9  ;;  %v2845_v53 = vpop.f32.mrf.mxu1 }
 0x1e4   : > { %v2879_v14 = vpop.f32.mrf.mxu0 }
 0x1e5   : > { %v2173_v36 = vmul.f32 1.442695, %v2154_v21  ;;  %v3876_v13 = vadd.f32 %v3862_v59, %v2112_v33  ;;  %v1880_v50 = vpop.f32.mrf.mxu1 }
 0x1e6   : > { %v2050_v29 = vpop.f32.mrf.mxu0  ;;  %v1937_v3 = vadd.f32 %v1880_v50, %v3821_v41 }
 0x1e7   : > { %2969 = vpow2.f32 %v2173_v36  ;;  %v2155_v49 = vsub.f32 0.0, %v3876_v13  ;;  %v2113_v8 = vadd.f32 %v2050_v29, %v1935_v35  ;;  %v2846_v48 = vpop.f32.mrf.mxu1 }
 0x1e8   : > { %v2880_v42 = vpop.f32.mrf.mxu0 }
 0x1e9   : > { %v2175_v52 = vmul.f32 1.442695, %v2155_v49  ;;  %v3881_v55 = vadd.f32 %v3862_v59, %v2113_v8  ;;  %v1885_v62 = vpop.f32.mrf.mxu1 }
 0x1ea   : > { %v2055_v40 = vpop.f32.mrf.mxu0  ;;  %v1938_v51 = vadd.f32 %v1885_v62, %v3824_v22 }
 0x1eb   : > { %2971 = vpow2.f32 %v2175_v52  ;;  %v2156_v31 = vsub.f32 0.0, %v3881_v55  ;;  %v2114_v15 = vadd.f32 %v2055_v40, %v1936_v47  ;;  %v2849_v46 = vpop.f32.mrf.mxu1 }
 0x1ec   : > { %v2883_v11 = vpop.f32.mrf.mxu0 }
 0x1ed   : > { %v2177_v2 = vmul.f32 1.442695, %v2156_v31  ;;  %v3886_v61 = vadd.f32 %v3862_v59, %v2114_v15  ;;  %v1888_v43 = vpop.f32.mrf.mxu1 }
 0x1ee   : > { %v2058_v57 = vpop.f32.mrf.mxu0  ;;  %v1939_v28 = vadd.f32 %v1888_v43, %v3827_v32 }
 0x1ef   : > { %2973 = vpow2.f32 %v2177_v2  ;;  %v2157_v0 = vsub.f32 0.0, %v3886_v61  ;;  %v2115_v18 = vadd.f32 %v2058_v57, %v1937_v3  ;;  %v2850_v41 = vpop.f32.mrf.mxu1 }
 0x1f0   : > { %v2968_v63 = vpop.eup %2967  ;;  %v2884_v12 = vpop.f32.mrf.mxu0 }
 0x1f1   : > { %v2207_v16 = vadd.f32 1.0, %v2968_v63  ;;  %v2179_v54 = vmul.f32 1.442695, %v2157_v0  ;;  %v3891_v38 = vadd.f32 %v3862_v59, %v2115_v18  ;;  %v1893_v26 = vpop.f32.mrf.mxu1 }
 0x1f2   : > { %v2063_v23 = vpop.f32.mrf.mxu0  ;;  %v1940_v36 = vadd.f32 %v1893_v26, %v3830_v45 }
 0x1f3   : > { %2975 = vrcp.f32 %v2207_v16  ;;  %v2158_v58 = vsub.f32 0.0, %v3891_v38  ;;  %v2116_v24 = vadd.f32 %v2063_v23, %v1938_v51  ;;  %v2853_v25 = vpop.f32.mrf.mxu1 }
 0x1f4   : > { %v2970_v19 = vpop.eup %2969  ;;  %2977 = vpow2.f32 %v2179_v54  ;;  %v2887_v6 = vpop.f32.mrf.mxu0 }
 0x1f5   : > { %v2208_v27 = vadd.f32 1.0, %v2970_v19  ;;  %v2181_v9 = vmul.f32 1.442695, %v2158_v58  ;;  %v3896_v22 = vadd.f32 %v3862_v59, %v2116_v24  ;;  %v1896_v30 = vpop.f32.mrf.mxu1 }
 0x1f6   : > { %v2066_v34 = vpop.f32.mrf.mxu0  ;;  %v1941_v40 = vadd.f32 %v1896_v30, %v3833_v60 }
 0x1f7   : > { %2979 = vrcp.f32 %v2208_v27  ;;  %v2159_v5 = vsub.f32 0.0, %v3896_v22  ;;  %v2117_v21 = vadd.f32 %v2066_v34, %v1939_v28  ;;  %v2854_v29 = vpop.f32.mrf.mxu1 }
 0x1f8   : > { %v2972_v33 = vpop.eup %2971  ;;  %2981 = vpow2.f32 %v2181_v9  ;;  %v2888_v14 = vpop.f32.mrf.mxu0 }
 0x1f9   : > { %v2209_v35 = vadd.f32 1.0, %v2972_v33  ;;  %v2183_v53 = vmul.f32 1.442695, %v2159_v5  ;;  %v3901_v32 = vadd.f32 %v3862_v59, %v2117_v21  ;;  %v1901_v47 = vpop.f32.mrf.mxu1 }
 0x1fa   : > { %v2071_v49 = vpop.f32.mrf.mxu0  ;;  %v1942_v18 = vadd.f32 %v1901_v47, %v3836_v10 }
 0x1fb   : > { %2983 = vrcp.f32 %v2209_v35  ;;  %v2160_v8 = vsub.f32 0.0, %v3901_v32  ;;  %v2118_v50 = vadd.f32 %v2071_v49, %v1940_v36  ;;  %v2857_v15 = vpop.f32.mrf.mxu1 }
 0x1fc   : > { %v2974_v42 = vpop.eup %2973  ;;  %2985 = vpow2.f32 %v2183_v53  ;;  %v2891_v52 = vpop.f32.mrf.mxu0 }
 0x1fd   : > { %v2210_v48 = vadd.f32 1.0, %v2974_v42  ;;  %v2185_v31 = vmul.f32 1.442695, %v2160_v8  ;;  %v3907_v45 = vadd.f32 %v3862_v59, %v2118_v50  ;;  %v1904_v60 = vpop.f32.mrf.mxu1 }
 0x1fe   : > { %v2074_v62 = vpop.f32.mrf.mxu0  ;;  %v1943_v19 = vadd.f32 %v1904_v60, %v3839_v7 }
 0x1ff   : > { %2987 = vrcp.f32 %v2210_v48  ;;  %v2161_v11 = vsub.f32 0.0, %v3907_v45  ;;  %v2119_v3 = vadd.f32 %v2074_v62, %v1941_v40  ;;  %v2858_v16 = vpop.f32.mrf.mxu1 }
 0x200   : > { %v2976_v2 = vpop.eup %2975  ;;  %2989 = vpow2.f32 %v2185_v31  ;;  %v2892_v46 = vpop.f32.mrf.mxu0 }
 0x201   : > { %v2978_v57 = vpop.eup %2977  ;;  %v2243_v0 = vmul.f32 %v2976_v2, %v3866_v44  ;;  %v2187_v63 = vmul.f32 1.442695, %v2161_v11  ;;  %v3918_v43 = vadd.f32 %v3862_v59, %v2119_v3  ;;  %v1909_v58 = vpop.f32.mrf.mxu1 }
 0x202   : > { %v2211_v12 = vadd.f32 1.0, %v2978_v57  ;;  %v2079_v51 = vpop.f32.mrf.mxu0  ;;  %v1944_v30 = vadd.f32 %v1909_v58, %v3842_v56 }
 0x203   : > { %2262 = vst.msk [vmem:[%s3913_s13] sm:$0xff] %vm2261_vm9, %v2243_v0  ;;  %2991 = vpow2.f32 %v2187_v63  ;;  %v2162_v54 = vsub.f32 0.0, %v3918_v43  ;;  %v2120_v41 = vadd.f32 %v2079_v51, %v1942_v18  ;;  %v2861_v28 = vpop.f32.mrf.mxu1 }
 0x204   : > { %v2980_v23 = vpop.eup %2979  ;;  %2993 = vrcp.f32 %v2211_v12  ;;  %v2895_v44 = vpop.f32.mrf.mxu0 }
 0x205   : > { %v2982_v24 = vpop.eup %2981  ;;  %v2244_v10 = vmul.f32 %v2980_v23, %v3871_v4  ;;  %v2189_v26 = vmul.f32 1.442695, %v2162_v54  ;;  %v3926_v6 = vadd.f32 %v3862_v59, %v2120_v41  ;;  %v1912_v21 = vpop.f32.mrf.mxu1 }
 0x206   : > { %v2212_v27 = vadd.f32 1.0, %v2982_v24  ;;  %v2082_v9 = vpop.f32.mrf.mxu0  ;;  %v1945_v52 = vadd.f32 %v1912_v21, %v3845_v17 }
 0x207   : > { %2263 = vst.msk [vmem:[%s3913_s13 + $0x8] sm:$0xff] %vm2261_vm9, %v2244_v10  ;;  %2995 = vpow2.f32 %v2189_v26  ;;  %v2163_v25 = vsub.f32 0.0, %v3926_v6  ;;  %v2121_v34 = vadd.f32 %v2082_v9, %v1943_v19  ;;  %v2862_v53 = vpop.f32.mrf.mxu1 }
 0x208   : > { %v2984_v5 = vpop.eup %2983  ;;  %2997 = vrcp.f32 %v2212_v27  ;;  %v2896_v4 = vpop.f32.mrf.mxu0 }
 0x209   : > { %v2986_v33 = vpop.eup %2985  ;;  %v2245_v7 = vmul.f32 %v2984_v5, %v3876_v13  ;;  %v2191_v14 = vmul.f32 1.442695, %v2163_v25  ;;  %v3934_v35 = vadd.f32 %v3862_v59, %v2121_v34  ;;  %v1917_v42 = vpop.f32.mrf.mxu1 }
 0x20a   : > { %v2213_v36 = vadd.f32 1.0, %v2986_v33  ;;  %v2087_v29 = vpop.f32.mrf.mxu0  ;;  %v1946_v57 = vadd.f32 %v1917_v42, %v3848_v1 }
 0x20b   : > { %2264 = vst.msk [vmem:[%s3913_s13 + $0x10] sm:$0xff] %vm2261_vm9, %v2245_v7  ;;  %2999 = vpow2.f32 %v2191_v14  ;;  %v2164_v49 = vsub.f32 0.0, %v3934_v35  ;;  %v2122_v8 = vadd.f32 %v2087_v29, %v1944_v30  ;;  %v2865_v15 = vpop.f32.mrf.mxu1 }
 0x20c   : > { %v2988_v50 = vpop.eup %2987  ;;  %3001 = vrcp.f32 %v2213_v36  ;;  %v2899_v13 = vpop.f32.mrf.mxu0 }
 0x20d   : > { %v2990_v47 = vpop.eup %2989  ;;  %v2246_v56 = vmul.f32 %v2988_v50, %v3881_v55  ;;  %v2193_v48 = vmul.f32 1.442695, %v2164_v49  ;;  %v3942_v40 = vadd.f32 %v3862_v59, %v2122_v8  ;;  %v1920_v60 = vpop.f32.mrf.mxu1 }
 0x20e   : > { %v2214_v31 = vadd.f32 1.0, %v2990_v47  ;;  %v2090_v62 = vpop.f32.mrf.mxu0  ;;  %v1947_v24 = vadd.f32 %v1920_v60, %v3851_v37 }
 0x20f   : > { %2265 = vst.msk [vmem:[%s3913_s13 + $0x18] sm:$0xff] %vm2261_vm9, %v2246_v56  ;;  %3003 = vpow2.f32 %v2193_v48  ;;  %v2165_v11 = vsub.f32 0.0, %v3942_v40  ;;  %v2123_v3 = vadd.f32 %v2090_v62, %v1945_v52  ;;  %v2866_v12 = vpop.f32.mrf.mxu1 }
 0x210   : > { %v2992_v2 = vpop.eup %2991  ;;  %3005 = vrcp.f32 %v2214_v31  ;;  %v2900_v55 = vpop.f32.mrf.mxu0 }
 0x211   : > { %v2994_v46 = vpop.eup %2993  ;;  %v2215_v17 = vadd.f32 1.0, %v2992_v2  ;;  %v2195_v0 = vmul.f32 1.442695, %v2165_v11  ;;  %v3949_v18 = vadd.f32 %v3862_v59, %v2123_v3  ;;  %v1925_v23 = vpop.f32.mrf.mxu1 }
 0x212   : > { %v2247_v63 = vmul.f32 %v2994_v46, %v3886_v61  ;;  %v2095_v16 = vpop.f32.mrf.mxu0  ;;  %v1948_v4 = vadd.f32 %v1925_v23, %v3854_v39 }
 0x213   : > { %3007 = vrcp.f32 %v2215_v17  ;;  %v2166_v51 = vsub.f32 0.0, %v3949_v18  ;;  %v2124_v54 = vadd.f32 %v2095_v16, %v1946_v57  ;;  %v2869_v26 = vpop.f32.mrf.mxu1 }
 0x214   : > { %v2996_v41 = vpop.eup %2995  ;;  %2266 = vst.msk [vmem:[%s3913_s13 + $0x20] sm:$0xff] %vm2261_vm9, %v2247_v63  ;;  %3009 = vpow2.f32 %v2195_v0  ;;  %v2903_v58 = vpop.f32.mrf.mxu0 }
 0x215   : > { %v2998_v1 = vpop.eup %2997  ;;  %v2216_v44 = vadd.f32 1.0, %v2996_v41  ;;  %v2197_v10 = vmul.f32 1.442695, %v2166_v51  ;;  %v3957_v61 = vadd.f32 %v3862_v59, %v2124_v54  ;;  %v1928_v34 = vpop.f32.mrf.mxu1 }
 0x216   : > { %v2248_v19 = vmul.f32 %v2998_v1, %v3891_v38  ;;  %v2098_v27 = vpop.f32.mrf.mxu0  ;;  %v1949_v50 = vadd.f32 %v1928_v34, %v3856_v20 }
 0x217   : > { %3011 = vrcp.f32 %v2216_v44  ;;  %v2167_v28 = vsub.f32 0.0, %v3957_v61  ;;  %v2125_v9 = vadd.f32 %v2098_v27, %v1947_v24  ;;  %v2870_v30 = vpop.f32.mrf.mxu1 }
 0x218   : > { %v3000_v25 = vpop.eup %2999  ;;  %2267 = vst.msk [vmem:[%s3913_s13 + $0x28] sm:$0xff] %vm2261_vm9, %v2248_v19  ;;  %3013 = vpow2.f32 %v2197_v10  ;;  %v2904_v5 = vpop.f32.mrf.mxu0 }
 0x219   : > { %v3002_v37 = vpop.eup %3001  ;;  %v2217_v21 = vadd.f32 1.0, %v3000_v25  ;;  %v2199_v33 = vmul.f32 1.442695, %v2167_v28  ;;  %v3965_v38 = vadd.f32 %v3862_v59, %v2125_v9 }
 0x21a   : > { %v2249_v7 = vmul.f32 %v3002_v37, %v3896_v22  ;;  %v2103_v14 = vpop.f32.mrf.mxu0 }
 0x21b   : > { %3015 = vrcp.f32 %v2217_v21  ;;  %v2168_v36 = vsub.f32 0.0, %v3965_v38  ;;  %v2126_v53 = vadd.f32 %v2103_v14, %v1948_v4 }
 0x21c   : > { %v3004_v29 = vpop.eup %3003  ;;  %2268 = vst.msk [vmem:[%s3913_s13 + $0x30] sm:$0xff] %vm2261_vm9, %v2249_v7  ;;  %3017 = vpow2.f32 %v2199_v33  ;;  %v2907_v49 = vpop.f32.mrf.mxu0 }
 0x21d   : > { %v3006_v8 = vpop.eup %3005  ;;  %v2218_v39 = vadd.f32 1.0, %v3004_v29  ;;  %v2201_v42 = vmul.f32 1.442695, %v2168_v36  ;;  %v2151_v22 = vadd.f32 %v3862_v59, %v2126_v53 }
 0x21e   : > { %v2250_v13 = vmul.f32 %v3006_v8, %v3901_v32  ;;  %v2106_v47 = vpop.f32.mrf.mxu0 }
 0x21f   : > { %3019 = vrcp.f32 %v2218_v39  ;;  %v2169_v56 = vsub.f32 0.0, %v2151_v22  ;;  %v2127_v52 = vadd.f32 %v2106_v47, %v1949_v50 }
 0x220   : > { %v3008_v48 = vpop.eup %3007  ;;  %2269 = vst.msk [vmem:[%s3913_s13 + $0x38] sm:$0xff] %vm2261_vm9, %v2250_v13  ;;  %3021 = vpow2.f32 %v2201_v42  ;;  %v2908_v31 = vpop.f32.mrf.mxu0 }
 0x221   : > { %v3010_v15 = vpop.eup %3009  ;;  %v2251_v62 = vmul.f32 %v3008_v48, %v3907_v45  ;;  %v2203_v20 = vmul.f32 1.442695, %v2169_v56  ;;  %v2152_v11 = vadd.f32 %v3862_v59, %v2127_v52 }
 0x222   : > { %v2219_v3 = vadd.f32 1.0, %v3010_v15 }
 0x223   : > { %2270 = vst.msk [vmem:[%s3913_s13 + $0x40] sm:$0xff] %vm2261_vm9, %v2251_v62  ;;  %3023 = vpow2.f32 %v2203_v20  ;;  %v2170_v32 = vsub.f32 0.0, %v2152_v11 }
 0x224   : > { %v3012_v2 = vpop.eup %3011  ;;  %3025 = vrcp.f32 %v2219_v3 }
 0x225   : > { %v3014_v60 = vpop.eup %3013  ;;  %v2252_v55 = vmul.f32 %v3012_v2, %v3918_v43  ;;  %v2205_v46 = vmul.f32 1.442695, %v2170_v32 }
 0x226   : > { %v2220_v17 = vadd.f32 1.0, %v3014_v60 }
 0x227   : > { %2271 = vst.msk [vmem:[%s3913_s13 + $0x48] sm:$0xff] %vm2261_vm9, %v2252_v55  ;;  %3027 = vpow2.f32 %v2205_v46 }
 0x228   : > { %v3016_v45 = vpop.eup %3015  ;;  %3029 = vrcp.f32 %v2220_v17 }
 0x229   : > { %v3018_v59 = vpop.eup %3017  ;;  %v2253_v57 = vmul.f32 %v3016_v45, %v3926_v6 }
 0x22a   : > { %v2221_v0 = vadd.f32 1.0, %v3018_v59 }
 0x22b   : > { %2272 = vst.msk [vmem:[%s3913_s13 + $0x50] sm:$0xff] %vm2261_vm9, %v2253_v57 }
 0x22c   : > { %v3020_v63 = vpop.eup %3019  ;;  %3031 = vrcp.f32 %v2221_v0 }
 0x22d   : > { %v3022_v12 = vpop.eup %3021  ;;  %v2254_v43 = vmul.f32 %v3020_v63, %v3934_v35 }
 0x22e   : > { %v2222_v16 = vadd.f32 1.0, %v3022_v12 }
 0x22f   : > { %2273 = vst.msk [vmem:[%s3913_s13 + $0x58] sm:$0xff] %vm2261_vm9, %v2254_v43 }
 0x230   : > { %v3024_v51 = vpop.eup %3023  ;;  %3033 = vrcp.f32 %v2222_v16 }
 0x231   : > { %v3026_v54 = vpop.eup %3025  ;;  %v2223_v41 = vadd.f32 1.0, %v3024_v51 }
 0x232   : > { %v2255_v6 = vmul.f32 %v3026_v54, %v3942_v40 }
 0x233   : > { %3035 = vrcp.f32 %v2223_v41 }
 0x234   : > { %v3028_v23 = vpop.eup %3027  ;;  %2274 = vst.msk [vmem:[%s3913_s13 + $0x60] sm:$0xff] %vm2261_vm9, %v2255_v6 }
 0x235   : > { %v3030_v58 = vpop.eup %3029  ;;  %v2224_v1 = vadd.f32 1.0, %v3028_v23 }
 0x236   : > { %v2256_v35 = vmul.f32 %v3030_v58, %v3949_v18 }
 0x237   : > { %3037 = vrcp.f32 %v2224_v1 }
 0x238   : > { %2275 = vst.msk [vmem:[%s3913_s13 + $0x68] sm:$0xff] %vm2261_vm9, %v2256_v35 }
 0x239   : > { %v3032_v44 = vpop.eup %3031 }
 0x23a   : > { %v2257_v24 = vmul.f32 %v3032_v44, %v3957_v61 }
 0x23c   : > { %2276 = vst.msk [vmem:[%s3913_s13 + $0x70] sm:$0xff] %vm2261_vm9, %v2257_v24 }
 0x23d   : > { %v3034_v10 = vpop.eup %3033 }
 0x23e   : > { %v2258_v40 = vmul.f32 %v3034_v10, %v3965_v38 }
 0x240   : > { %v3036_v19 = vpop.eup %3035  ;;  %2277 = vst.msk [vmem:[%s3913_s13 + $0x78] sm:$0xff] %vm2261_vm9, %v2258_v40 }
 0x241   : > { %v2259_v26 = vmul.f32 %v3036_v19, %v2151_v22 }
 0x243   : > { %2278 = vst.msk [vmem:[%s3913_s13 + $0x80] sm:$0xff] %vm2261_vm9, %v2259_v26 }
 0x244   : > { %v3038_v27 = vpop.eup %3037 }
 0x245   : > { %v2260_v28 = vmul.f32 %v3038_v27, %v2152_v11 }
 0x247   : > { %2279 = vst.msk [vmem:[%s3913_s13 + $0x88] sm:$0xff] %vm2261_vm9, %v2260_v28 }
 0x248 PF: > { %s13_s12 = sadd.s32 1, %s3045_s12  }
 0x249   : > { %p10_p4 = scmp.ge.s32.totalorder %s13_s12, 4  }
 0x24b   :  { %12 = sbr.rel (!%p10_p4) target bundleno = 1 (0x1), region = 70 }

</bundles_post_ra>
